<compile_context>
chip_gen: v7x
topology: tpu7x:2x2x1
jax: 0.10.0
libtpu: 0.0.40
codegen_flags: <defaults>
</compile_context>

<pallas_src>
import math
import jax
import jax.numpy as jnp
from jax.experimental import pallas as pl
from jax.experimental.pallas import tpu as pltpu

# ----------------------------- small BERT config -----------------------------
VOCAB      = 100
TYPE_VOCAB = 2
MAX_POS    = 16
HIDDEN     = 32
HEADS      = 2
HEAD_DIM   = HIDDEN // HEADS
INTER      = 64
LAYERS     = 2
LN_EPS     = 1e-12


# ------------------------------ kernel helpers -------------------------------
def _layernorm(x, g, b):
    mu  = jnp.mean(x, axis=-1, keepdims=True)
    var = jnp.mean((x - mu) ** 2, axis=-1, keepdims=True)
    return (x - mu) * jax.lax.rsqrt(var + LN_EPS) * g + b


def _gelu(x):
    # TODO(synk): HF BERT uses exact erf-GELU; tanh approximation used here (EUP-friendly).
    c = math.sqrt(2.0 / math.pi)
    return 0.5 * x * (1.0 + jnp.tanh(c * (x + 0.044715 * x * x * x)))


# ------------------------------ fused Pallas kernel ---------------------------
def bert_kernel(emb_ref, mask_ref, eg_ref, eb_ref,
                wqkv_ref, bqkv_ref, wo_ref, bo_ref, ln1g_ref, ln1b_ref,
                w1_ref, b1_ref, w2_ref, b2_ref, ln2g_ref, ln2b_ref,
                o_ref):
    _, S, H = emb_ref.shape              # per-batch block: [1, S, H]
    L = wqkv_ref.shape[0]
    D = H // HEADS

    # ---- embedding LayerNorm (fused) ----
    h = _layernorm(emb_ref[0].astype(jnp.float32), eg_ref[...], eb_ref[...])   # [S, H]

    # ---- additive attention bias, loop-invariant: [1, S] broadcasts over rows ----
    bias = (1.0 - mask_ref[0].astype(jnp.float32)) * -10000.0                  # [1, S]

    # ---- static loop over encoder layers; activation stays on-chip ----
    for l in range(L):
        # fused QKV projection: one [S, H] x [H, 3H] MXU push (scale pre-folded into Wq)
        qkv = jnp.dot(h.astype(jnp.bfloat16), wqkv_ref[l],
                      preferred_element_type=jnp.float32) + bqkv_ref[l]        # [S, 3H]

        ctx = []
        for hh in range(HEADS):          # static 2-iteration head loop, lane slices only
            q = qkv[:, hh * D:(hh + 1) * D].astype(jnp.bfloat16)               # [S, D]
            k = qkv[:, H + hh * D:H + (hh + 1) * D].astype(jnp.bfloat16)       # [S, D]
            v = qkv[:, 2 * H + hh * D:2 * H + (hh + 1) * D].astype(jnp.bfloat16)
            # q @ k^T without materializing a transpose
            s = jax.lax.dot_general(q, k, (((1,), (1,)), ((), ())),
                                    preferred_element_type=jnp.float32)        # [S, S]
            s = s + bias
            s = s - jnp.max(s, axis=-1, keepdims=True)
            p = jnp.exp(s)
            p = p * pl.reciprocal(jnp.sum(p, axis=-1, keepdims=True), approx=True)
            ctx.append(jnp.dot(p.astype(jnp.bfloat16), v,
                               preferred_element_type=jnp.float32))            # [S, D]
        ctx = jnp.concatenate(ctx, axis=-1)                                    # [S, H]

        attn = jnp.dot(ctx.astype(jnp.bfloat16), wo_ref[l],
                       preferred_element_type=jnp.float32) + bo_ref[l]
        h1 = _layernorm(h + attn, ln1g_ref[l], ln1b_ref[l])

        ff = _gelu(jnp.dot(h1.astype(jnp.bfloat16), w1_ref[l],
                           preferred_element_type=jnp.float32) + b1_ref[l])
        ff = jnp.dot(ff.astype(jnp.bfloat16), w2_ref[l],
                     preferred_element_type=jnp.float32) + b2_ref[l]
        h = _layernorm(h1 + ff, ln2g_ref[l], ln2b_ref[l])

    o_ref[0] = h.astype(o_ref.dtype)


# ------------------------------ Pallas wrapper --------------------------------
def pallas_bert_forward(emb, mask, params):
    """emb: f32 [B, S, H] summed embeddings; mask: int32 [B, S]."""
    B, S, H = emb.shape
    L = params["wq"].shape[0]
    I = params["w1"].shape[2]
    scale = 1.0 / math.sqrt(H // HEADS)

    # Fold attention scale into Wq/bq, fuse QKV, and cast matmul weights to bf16.
    wqkv = jnp.concatenate([params["wq"] * scale, params["wk"], params["wv"]],
                           axis=2).astype(jnp.bfloat16)                        # [L, H, 3H]
    bqkv = jnp.concatenate([params["bq"] * scale, params["bk"], params["bv"]],
                           axis=2)                                             # [L, 1, 3H] f32
    wo = params["wo"].astype(jnp.bfloat16)
    w1 = params["w1"].astype(jnp.bfloat16)
    w2 = params["w2"].astype(jnp.bfloat16)

    mask3 = mask.astype(jnp.int32).reshape(B, 1, S)

    def resident(shape):
        nd = len(shape)
        return pl.BlockSpec(shape, lambda b: (0,) * nd)      # same block every step

    in_specs = [
        pl.BlockSpec((1, S, H), lambda b: (b, 0, 0)),        # per-batch embeddings
        pl.BlockSpec((1, 1, S), lambda b: (b, 0, 0)),        # per-batch int mask
        resident((1, H)), resident((1, H)),                  # emb LN gamma, beta
        resident((L, H, 3 * H)), resident((L, 1, 3 * H)),    # fused Wqkv, bqkv
        resident((L, H, H)), resident((L, 1, H)),            # Wo, bo
        resident((L, 1, H)), resident((L, 1, H)),            # ln1 gamma, beta
        resident((L, H, I)), resident((L, 1, I)),            # W1, b1
        resident((L, I, H)), resident((L, 1, H)),            # W2, b2
        resident((L, 1, H)), resident((L, 1, H)),            # ln2 gamma, beta
    ]

    return pl.pallas_call(
        bert_kernel,
        out_shape=jax.ShapeDtypeStruct((B, S, H), jnp.float32),
        grid=(B,),
        in_specs=in_specs,
        out_specs=pl.BlockSpec((1, S, H), lambda b: (b, 0, 0)),
        compiler_params=pltpu.CompilerParams(
            dimension_semantics=("parallel",)),               # v7x: batch across 2 TCs
    )(emb, mask3,
      params["emb_ln_g"], params["emb_ln_b"],
      wqkv, bqkv, wo, params["bo"],
      params["ln1g"], params["ln1b"],
      w1, params["b1"], w2, params["b2"],
      params["ln2g"], params["ln2b"])


# ------------------------------ parameter init ---------------------------------
def init_params(key):
    std = 0.02
    k = jax.random.split(key, 9)

    def nrm(kk, shape):
        return jax.random.normal(kk, shape, jnp.float32) * std

    return {
        "word_emb": nrm(k[0], (VOCAB, HIDDEN)),
        "pos_emb":  nrm(k[1], (MAX_POS, HIDDEN)),
        "type_emb": nrm(k[2], (TYPE_VOCAB, HIDDEN)),
        "emb_ln_g": jnp.ones((1, HIDDEN), jnp.float32),
        "emb_ln_b": jnp.zeros((1, HIDDEN), jnp.float32),
        # per-layer weights stacked along a leading LAYERS axis
        "wq": nrm(k[3], (LAYERS, HIDDEN, HIDDEN)),
        "bq": jnp.zeros((LAYERS, 1, HIDDEN), jnp.float32),
        "wk": nrm(k[4], (LAYERS, HIDDEN, HIDDEN)),
        "bk": jnp.zeros((LAYERS, 1, HIDDEN), jnp.float32),
        "wv": nrm(k[5], (LAYERS, HIDDEN, HIDDEN)),
        "bv": jnp.zeros((LAYERS, 1, HIDDEN), jnp.float32),
        "wo": nrm(k[6], (LAYERS, HIDDEN, HIDDEN)),
        "bo": jnp.zeros((LAYERS, 1, HIDDEN), jnp.float32),
        "ln1g": jnp.ones((LAYERS, 1, HIDDEN), jnp.float32),
        "ln1b": jnp.zeros((LAYERS, 1, HIDDEN), jnp.float32),
        "w1": nrm(k[7], (LAYERS, HIDDEN, INTER)),
        "b1": jnp.zeros((LAYERS, 1, INTER), jnp.float32),
        "w2": nrm(k[8], (LAYERS, INTER, HIDDEN)),
        "b2": jnp.zeros((LAYERS, 1, HIDDEN), jnp.float32),
        "ln2g": jnp.ones((LAYERS, 1, HIDDEN), jnp.float32),
        "ln2b": jnp.zeros((LAYERS, 1, HIDDEN), jnp.float32),
    }


# ------------------------------ full forward -----------------------------------
def bert_forward(params, x, segs, mask):
    """x, segs, mask: int32 [B, S].  Returns top_vec float32 [B, S, H]."""
    B, S = x.shape
    pos_ids = jnp.arange(S, dtype=jnp.int32)

    # Embedding gathers are glue in plain JAX (data-dependent gather).
    emb = (jnp.take(params["word_emb"], x, axis=0)
           + jnp.take(params["pos_emb"], pos_ids, axis=0)[None, :, :]
           + jnp.take(params["type_emb"], segs, axis=0))           # [B, S, H]

    return pallas_bert_forward(emb, mask.astype(jnp.int32), params)


# ------------------------------------ main --------------------------------------
if __name__ == "__main__":
    key = jax.random.PRNGKey(0)
    pkey, xkey, skey = jax.random.split(key, 3)

    B, S = 2, 8
    params = init_params(pkey)

    x    = jax.random.randint(xkey, (B, S), 0, VOCAB, dtype=jnp.int32)
    segs = jax.random.randint(skey, (B, S), 0, TYPE_VOCAB, dtype=jnp.int32)
    # second example has its last two tokens padded out
    lens = jnp.array([S, S - 2], dtype=jnp.int32)
    mask = (jnp.arange(S, dtype=jnp.int32)[None, :] < lens[:, None]).astype(jnp.int32)

    fwd = jax.jit(bert_forward)
    top_vec = fwd(params, x, segs, mask)
    jax.block_until_ready(top_vec)
    assert top_vec.shape == (B, S, HIDDEN)
    print("KERNEL_OK")
</pallas_src>

<mosaic_0001>
module attributes {stable_mosaic.version = 11 : i64} {
  func.func @bert_kernel(%arg0: i32, %arg1: memref<1x8x32xf32, #tpu.memory_space<vmem>>, %arg2: memref<1x1x8xi32, #tpu.memory_space<vmem>>, %arg3: memref<1x32xf32, #tpu.memory_space<vmem>>, %arg4: memref<1x32xf32, #tpu.memory_space<vmem>>, %arg5: memref<2x32x96xbf16, #tpu.memory_space<vmem>>, %arg6: memref<2x1x96xf32, #tpu.memory_space<vmem>>, %arg7: memref<2x32x32xbf16, #tpu.memory_space<vmem>>, %arg8: memref<2x1x32xf32, #tpu.memory_space<vmem>>, %arg9: memref<2x1x32xf32, #tpu.memory_space<vmem>>, %arg10: memref<2x1x32xf32, #tpu.memory_space<vmem>>, %arg11: memref<2x32x64xbf16, #tpu.memory_space<vmem>>, %arg12: memref<2x1x64xf32, #tpu.memory_space<vmem>>, %arg13: memref<2x64x32xbf16, #tpu.memory_space<vmem>>, %arg14: memref<2x1x32xf32, #tpu.memory_space<vmem>>, %arg15: memref<2x1x32xf32, #tpu.memory_space<vmem>>, %arg16: memref<2x1x32xf32, #tpu.memory_space<vmem>>, %arg17: memref<1x8x32xf32, #tpu.memory_space<vmem>>) attributes {dimension_semantics = [#tpu.dimension_semantics<parallel>], iteration_bounds = array<i64: 2>, scalar_prefetch = 0 : i64, scratch_operands = 0 : i64, tpu.core_type = #tpu.core_type<tc>, window_params = [{transform_indices = @transform_0, window_bounds = array<i64: 1, 8, 32>}, {transform_indices = @transform_1, window_bounds = array<i64: 1, 1, 8>}, {pipeline_mode = #tpu.pipeline_mode<synchronous>, transform_indices = @transform_2, window_bounds = array<i64: 1, 32>}, {pipeline_mode = #tpu.pipeline_mode<synchronous>, transform_indices = @transform_3, window_bounds = array<i64: 1, 32>}, {pipeline_mode = #tpu.pipeline_mode<synchronous>, transform_indices = @transform_4, window_bounds = array<i64: 2, 32, 96>}, {pipeline_mode = #tpu.pipeline_mode<synchronous>, transform_indices = @transform_5, window_bounds = array<i64: 2, 1, 96>}, {pipeline_mode = #tpu.pipeline_mode<synchronous>, transform_indices = @transform_6, window_bounds = array<i64: 2, 32, 32>}, {pipeline_mode = #tpu.pipeline_mode<synchronous>, transform_indices = @transform_7, window_bounds = array<i64: 2, 1, 32>}, {pipeline_mode = #tpu.pipeline_mode<synchronous>, transform_indices = @transform_8, window_bounds = array<i64: 2, 1, 32>}, {pipeline_mode = #tpu.pipeline_mode<synchronous>, transform_indices = @transform_9, window_bounds = array<i64: 2, 1, 32>}, {pipeline_mode = #tpu.pipeline_mode<synchronous>, transform_indices = @transform_10, window_bounds = array<i64: 2, 32, 64>}, {pipeline_mode = #tpu.pipeline_mode<synchronous>, transform_indices = @transform_11, window_bounds = array<i64: 2, 1, 64>}, {pipeline_mode = #tpu.pipeline_mode<synchronous>, transform_indices = @transform_12, window_bounds = array<i64: 2, 64, 32>}, {pipeline_mode = #tpu.pipeline_mode<synchronous>, transform_indices = @transform_13, window_bounds = array<i64: 2, 1, 32>}, {pipeline_mode = #tpu.pipeline_mode<synchronous>, transform_indices = @transform_14, window_bounds = array<i64: 2, 1, 32>}, {pipeline_mode = #tpu.pipeline_mode<synchronous>, transform_indices = @transform_15, window_bounds = array<i64: 2, 1, 32>}, {transform_indices = @transform_16, window_bounds = array<i64: 1, 8, 32>}]} {
    %c0 = arith.constant 0 : index
    %c0_0 = arith.constant 0 : index
    %c0_1 = arith.constant 0 : index
    %0 = vector.load %arg1[%c0, %c0_0, %c0_1] : memref<1x8x32xf32, #tpu.memory_space<vmem>>, vector<1x8x32xf32>
    %1 = vector.shape_cast %0 : vector<1x8x32xf32> to vector<8x32xf32>
    %c0_2 = arith.constant 0 : index
    %c0_3 = arith.constant 0 : index
    %2 = vector.load %arg3[%c0_2, %c0_3] : memref<1x32xf32, #tpu.memory_space<vmem>>, vector<1x32xf32>
    %c0_4 = arith.constant 0 : index
    %c0_5 = arith.constant 0 : index
    %3 = vector.load %arg4[%c0_4, %c0_5] : memref<1x32xf32, #tpu.memory_space<vmem>>, vector<1x32xf32>
    %cst = arith.constant dense<0.000000e+00> : vector<8xf32>
    %4 = vector.multi_reduction <add>, %1, %cst [1] : vector<8x32xf32> to vector<8xf32>
    %5 = vector.shape_cast %4 : vector<8xf32> to vector<8x1xf32>
    %cst_6 = arith.constant 3.200000e+01 : f32
    %6 = vector.broadcast %cst_6 : f32 to vector<8x1xf32>
    %7 = arith.divf %5, %6 : vector<8x1xf32>
    %8 = vector.broadcast %7 : vector<8x1xf32> to vector<8x32xf32>
    %9 = arith.subf %1, %8 : vector<8x32xf32>
    %10 = arith.mulf %9, %9 : vector<8x32xf32>
    %cst_7 = arith.constant dense<0.000000e+00> : vector<8xf32>
    %11 = vector.multi_reduction <add>, %10, %cst_7 [1] : vector<8x32xf32> to vector<8xf32>
    %12 = vector.shape_cast %11 : vector<8xf32> to vector<8x1xf32>
    %cst_8 = arith.constant 3.200000e+01 : f32
    %13 = vector.broadcast %cst_8 : f32 to vector<8x1xf32>
    %14 = arith.divf %12, %13 : vector<8x1xf32>
    %15 = vector.broadcast %7 : vector<8x1xf32> to vector<8x32xf32>
    %16 = arith.subf %1, %15 : vector<8x32xf32>
    %cst_9 = arith.constant 9.99999996E-13 : f32
    %17 = vector.broadcast %cst_9 : f32 to vector<8x1xf32>
    %18 = arith.addf %14, %17 : vector<8x1xf32>
    %19 = math.rsqrt %18 : vector<8x1xf32>
    %20 = vector.broadcast %19 : vector<8x1xf32> to vector<8x32xf32>
    %21 = arith.mulf %16, %20 : vector<8x32xf32>
    %22 = vector.broadcast %2 : vector<1x32xf32> to vector<8x32xf32>
    %23 = arith.mulf %21, %22 : vector<8x32xf32>
    %24 = vector.broadcast %3 : vector<1x32xf32> to vector<8x32xf32>
    %25 = arith.addf %23, %24 : vector<8x32xf32>
    %c0_10 = arith.constant 0 : index
    %c0_11 = arith.constant 0 : index
    %c0_12 = arith.constant 0 : index
    %26 = vector.load %arg2[%c0_10, %c0_11, %c0_12] : memref<1x1x8xi32, #tpu.memory_space<vmem>>, vector<1x1x8xi32>
    %27 = vector.shape_cast %26 : vector<1x1x8xi32> to vector<1x8xi32>
    %28 = arith.sitofp %27 : vector<1x8xi32> to vector<1x8xf32>
    %cst_13 = arith.constant 1.000000e+00 : f32
    %29 = vector.broadcast %cst_13 : f32 to vector<1x8xf32>
    %30 = arith.subf %29, %28 : vector<1x8xf32>
    %cst_14 = arith.constant -1.000000e+04 : f32
    %31 = vector.broadcast %cst_14 : f32 to vector<1x8xf32>
    %32 = arith.mulf %30, %31 : vector<1x8xf32>
    %33 = arith.truncf %25 : vector<8x32xf32> to vector<8x32xbf16>
    %c0_15 = arith.constant 0 : index
    %c0_16 = arith.constant 0 : index
    %c0_17 = arith.constant 0 : index
    %34 = vector.load %arg5[%c0_15, %c0_16, %c0_17] : memref<2x32x96xbf16, #tpu.memory_space<vmem>>, vector<1x32x96xbf16>
    %35 = vector.shape_cast %34 : vector<1x32x96xbf16> to vector<32x96xbf16>
    %cst_18 = arith.constant dense<0.000000e+00> : vector<8x96xf32>
    %36 = tpu.matmul %33, %35, %cst_18 {dimension_numbers = #tpu.dot_dimension_numbers<[1], [0], [0], [1], [0, 0, 1, 1], [], []>} : vector<8x32xbf16>, vector<32x96xbf16>, vector<8x96xf32> -> vector<8x96xf32>
    %c0_19 = arith.constant 0 : index
    %c0_20 = arith.constant 0 : index
    %c0_21 = arith.constant 0 : index
    %37 = vector.load %arg6[%c0_19, %c0_20, %c0_21] : memref<2x1x96xf32, #tpu.memory_space<vmem>>, vector<1x1x96xf32>
    %38 = vector.shape_cast %37 : vector<1x1x96xf32> to vector<1x96xf32>
    %39 = vector.broadcast %38 : vector<1x96xf32> to vector<8x96xf32>
    %40 = arith.addf %36, %39 : vector<8x96xf32>
    %41 = vector.extract_strided_slice %40 {offsets = [0, 0], sizes = [8, 16], strides = [1, 1]} : vector<8x96xf32> to vector<8x16xf32>
    %42 = arith.truncf %41 : vector<8x16xf32> to vector<8x16xbf16>
    %43 = vector.extract_strided_slice %40 {offsets = [0, 32], sizes = [8, 16], strides = [1, 1]} : vector<8x96xf32> to vector<8x16xf32>
    %44 = arith.truncf %43 : vector<8x16xf32> to vector<8x16xbf16>
    %45 = vector.extract_strided_slice %40 {offsets = [0, 64], sizes = [8, 16], strides = [1, 1]} : vector<8x96xf32> to vector<8x16xf32>
    %46 = arith.truncf %45 : vector<8x16xf32> to vector<8x16xbf16>
    %cst_22 = arith.constant dense<0.000000e+00> : vector<8x8xf32>
    %47 = tpu.matmul %42, %44, %cst_22 {dimension_numbers = #tpu.dot_dimension_numbers<[1], [1], [0], [0], [0, 0, 1, 0], [], []>} : vector<8x16xbf16>, vector<8x16xbf16>, vector<8x8xf32> -> vector<8x8xf32>
    %48 = vector.broadcast %32 : vector<1x8xf32> to vector<8x8xf32>
    %49 = arith.addf %47, %48 : vector<8x8xf32>
    %cst_23 = arith.constant dense<0xFF800000> : vector<8xf32>
    %50 = vector.multi_reduction <maximumf>, %49, %cst_23 [1] : vector<8x8xf32> to vector<8xf32>
    %51 = vector.shape_cast %50 : vector<8xf32> to vector<8x1xf32>
    %52 = vector.broadcast %51 : vector<8x1xf32> to vector<8x8xf32>
    %53 = arith.subf %49, %52 : vector<8x8xf32>
    %54 = math.exp %53 : vector<8x8xf32>
    %cst_24 = arith.constant dense<0.000000e+00> : vector<8xf32>
    %55 = vector.multi_reduction <add>, %54, %cst_24 [1] : vector<8x8xf32> to vector<8xf32>
    %56 = vector.shape_cast %55 : vector<8xf32> to vector<8x1xf32>
    %57 = tpu.reciprocal %56 {approx = true} : vector<8x1xf32> -> vector<8x1xf32>
    %58 = vector.broadcast %57 : vector<8x1xf32> to vector<8x8xf32>
    %59 = arith.mulf %54, %58 : vector<8x8xf32>
    %60 = arith.truncf %59 : vector<8x8xf32> to vector<8x8xbf16>
    %cst_25 = arith.constant dense<0.000000e+00> : vector<8x16xf32>
    %61 = tpu.matmul %60, %46, %cst_25 {dimension_numbers = #tpu.dot_dimension_numbers<[1], [0], [0], [1], [0, 0, 1, 1], [], []>} : vector<8x8xbf16>, vector<8x16xbf16>, vector<8x16xf32> -> vector<8x16xf32>
    %62 = vector.extract_strided_slice %40 {offsets = [0, 16], sizes = [8, 16], strides = [1, 1]} : vector<8x96xf32> to vector<8x16xf32>
    %63 = arith.truncf %62 : vector<8x16xf32> to vector<8x16xbf16>
    %64 = vector.extract_strided_slice %40 {offsets = [0, 48], sizes = [8, 16], strides = [1, 1]} : vector<8x96xf32> to vector<8x16xf32>
    %65 = arith.truncf %64 : vector<8x16xf32> to vector<8x16xbf16>
    %66 = vector.extract_strided_slice %40 {offsets = [0, 80], sizes = [8, 16], strides = [1, 1]} : vector<8x96xf32> to vector<8x16xf32>
    %67 = arith.truncf %66 : vector<8x16xf32> to vector<8x16xbf16>
    %cst_26 = arith.constant dense<0.000000e+00> : vector<8x8xf32>
    %68 = tpu.matmul %63, %65, %cst_26 {dimension_numbers = #tpu.dot_dimension_numbers<[1], [1], [0], [0], [0, 0, 1, 0], [], []>} : vector<8x16xbf16>, vector<8x16xbf16>, vector<8x8xf32> -> vector<8x8xf32>
    %69 = vector.broadcast %32 : vector<1x8xf32> to vector<8x8xf32>
    %70 = arith.addf %68, %69 : vector<8x8xf32>
    %cst_27 = arith.constant dense<0xFF800000> : vector<8xf32>
    %71 = vector.multi_reduction <maximumf>, %70, %cst_27 [1] : vector<8x8xf32> to vector<8xf32>
    %72 = vector.shape_cast %71 : vector<8xf32> to vector<8x1xf32>
    %73 = vector.broadcast %72 : vector<8x1xf32> to vector<8x8xf32>
    %74 = arith.subf %70, %73 : vector<8x8xf32>
    %75 = math.exp %74 : vector<8x8xf32>
    %cst_28 = arith.constant dense<0.000000e+00> : vector<8xf32>
    %76 = vector.multi_reduction <add>, %75, %cst_28 [1] : vector<8x8xf32> to vector<8xf32>
    %77 = vector.shape_cast %76 : vector<8xf32> to vector<8x1xf32>
    %78 = tpu.reciprocal %77 {approx = true} : vector<8x1xf32> -> vector<8x1xf32>
    %79 = vector.broadcast %78 : vector<8x1xf32> to vector<8x8xf32>
    %80 = arith.mulf %75, %79 : vector<8x8xf32>
    %81 = arith.truncf %80 : vector<8x8xf32> to vector<8x8xbf16>
    %cst_29 = arith.constant dense<0.000000e+00> : vector<8x16xf32>
    %82 = tpu.matmul %81, %67, %cst_29 {dimension_numbers = #tpu.dot_dimension_numbers<[1], [0], [0], [1], [0, 0, 1, 1], [], []>} : vector<8x8xbf16>, vector<8x16xbf16>, vector<8x16xf32> -> vector<8x16xf32>
    %83 = tpu.concatenate %61, %82 in 1 : vector<8x16xf32>, vector<8x16xf32> -> vector<8x32xf32>
    %84 = arith.truncf %83 : vector<8x32xf32> to vector<8x32xbf16>
    %c0_30 = arith.constant 0 : index
    %c0_31 = arith.constant 0 : index
    %c0_32 = arith.constant 0 : index
    %85 = vector.load %arg7[%c0_30, %c0_31, %c0_32] : memref<2x32x32xbf16, #tpu.memory_space<vmem>>, vector<1x32x32xbf16>
    %86 = vector.shape_cast %85 : vector<1x32x32xbf16> to vector<32x32xbf16>
    %cst_33 = arith.constant dense<0.000000e+00> : vector<8x32xf32>
    %87 = tpu.matmul %84, %86, %cst_33 {dimension_numbers = #tpu.dot_dimension_numbers<[1], [0], [0], [1], [0, 0, 1, 1], [], []>} : vector<8x32xbf16>, vector<32x32xbf16>, vector<8x32xf32> -> vector<8x32xf32>
    %c0_34 = arith.constant 0 : index
    %c0_35 = arith.constant 0 : index
    %c0_36 = arith.constant 0 : index
    %88 = vector.load %arg8[%c0_34, %c0_35, %c0_36] : memref<2x1x32xf32, #tpu.memory_space<vmem>>, vector<1x1x32xf32>
    %89 = vector.shape_cast %88 : vector<1x1x32xf32> to vector<1x32xf32>
    %90 = vector.broadcast %89 : vector<1x32xf32> to vector<8x32xf32>
    %91 = arith.addf %87, %90 : vector<8x32xf32>
    %92 = arith.addf %25, %91 : vector<8x32xf32>
    %c0_37 = arith.constant 0 : index
    %c0_38 = arith.constant 0 : index
    %c0_39 = arith.constant 0 : index
    %93 = vector.load %arg9[%c0_37, %c0_38, %c0_39] : memref<2x1x32xf32, #tpu.memory_space<vmem>>, vector<1x1x32xf32>
    %94 = vector.shape_cast %93 : vector<1x1x32xf32> to vector<1x32xf32>
    %c0_40 = arith.constant 0 : index
    %c0_41 = arith.constant 0 : index
    %c0_42 = arith.constant 0 : index
    %95 = vector.load %arg10[%c0_40, %c0_41, %c0_42] : memref<2x1x32xf32, #tpu.memory_space<vmem>>, vector<1x1x32xf32>
    %96 = vector.shape_cast %95 : vector<1x1x32xf32> to vector<1x32xf32>
    %cst_43 = arith.constant dense<0.000000e+00> : vector<8xf32>
    %97 = vector.multi_reduction <add>, %92, %cst_43 [1] : vector<8x32xf32> to vector<8xf32>
    %98 = vector.shape_cast %97 : vector<8xf32> to vector<8x1xf32>
    %cst_44 = arith.constant 3.200000e+01 : f32
    %99 = vector.broadcast %cst_44 : f32 to vector<8x1xf32>
    %100 = arith.divf %98, %99 : vector<8x1xf32>
    %101 = vector.broadcast %100 : vector<8x1xf32> to vector<8x32xf32>
    %102 = arith.subf %92, %101 : vector<8x32xf32>
    %103 = arith.mulf %102, %102 : vector<8x32xf32>
    %cst_45 = arith.constant dense<0.000000e+00> : vector<8xf32>
    %104 = vector.multi_reduction <add>, %103, %cst_45 [1] : vector<8x32xf32> to vector<8xf32>
    %105 = vector.shape_cast %104 : vector<8xf32> to vector<8x1xf32>
    %cst_46 = arith.constant 3.200000e+01 : f32
    %106 = vector.broadcast %cst_46 : f32 to vector<8x1xf32>
    %107 = arith.divf %105, %106 : vector<8x1xf32>
    %108 = vector.broadcast %100 : vector<8x1xf32> to vector<8x32xf32>
    %109 = arith.subf %92, %108 : vector<8x32xf32>
    %cst_47 = arith.constant 9.99999996E-13 : f32
    %110 = vector.broadcast %cst_47 : f32 to vector<8x1xf32>
    %111 = arith.addf %107, %110 : vector<8x1xf32>
    %112 = math.rsqrt %111 : vector<8x1xf32>
    %113 = vector.broadcast %112 : vector<8x1xf32> to vector<8x32xf32>
    %114 = arith.mulf %109, %113 : vector<8x32xf32>
    %115 = vector.broadcast %94 : vector<1x32xf32> to vector<8x32xf32>
    %116 = arith.mulf %114, %115 : vector<8x32xf32>
    %117 = vector.broadcast %96 : vector<1x32xf32> to vector<8x32xf32>
    %118 = arith.addf %116, %117 : vector<8x32xf32>
    %119 = arith.truncf %118 : vector<8x32xf32> to vector<8x32xbf16>
    %c0_48 = arith.constant 0 : index
    %c0_49 = arith.constant 0 : index
    %c0_50 = arith.constant 0 : index
    %120 = vector.load %arg11[%c0_48, %c0_49, %c0_50] : memref<2x32x64xbf16, #tpu.memory_space<vmem>>, vector<1x32x64xbf16>
    %121 = vector.shape_cast %120 : vector<1x32x64xbf16> to vector<32x64xbf16>
    %cst_51 = arith.constant dense<0.000000e+00> : vector<8x64xf32>
    %122 = tpu.matmul %119, %121, %cst_51 {dimension_numbers = #tpu.dot_dimension_numbers<[1], [0], [0], [1], [0, 0, 1, 1], [], []>} : vector<8x32xbf16>, vector<32x64xbf16>, vector<8x64xf32> -> vector<8x64xf32>
    %c0_52 = arith.constant 0 : index
    %c0_53 = arith.constant 0 : index
    %c0_54 = arith.constant 0 : index
    %123 = vector.load %arg12[%c0_52, %c0_53, %c0_54] : memref<2x1x64xf32, #tpu.memory_space<vmem>>, vector<1x1x64xf32>
    %124 = vector.shape_cast %123 : vector<1x1x64xf32> to vector<1x64xf32>
    %125 = vector.broadcast %124 : vector<1x64xf32> to vector<8x64xf32>
    %126 = arith.addf %122, %125 : vector<8x64xf32>
    %cst_55 = arith.constant 5.000000e-01 : f32
    %127 = vector.broadcast %cst_55 : f32 to vector<8x64xf32>
    %128 = arith.mulf %127, %126 : vector<8x64xf32>
    %cst_56 = arith.constant 4.471500e-02 : f32
    %129 = vector.broadcast %cst_56 : f32 to vector<8x64xf32>
    %130 = arith.mulf %129, %126 : vector<8x64xf32>
    %131 = arith.mulf %130, %126 : vector<8x64xf32>
    %132 = arith.mulf %131, %126 : vector<8x64xf32>
    %133 = arith.addf %126, %132 : vector<8x64xf32>
    %cst_57 = arith.constant 0.797884583 : f32
    %134 = vector.broadcast %cst_57 : f32 to vector<8x64xf32>
    %135 = arith.mulf %134, %133 : vector<8x64xf32>
    %136 = math.tanh %135 : vector<8x64xf32>
    %cst_58 = arith.constant 1.000000e+00 : f32
    %137 = vector.broadcast %cst_58 : f32 to vector<8x64xf32>
    %138 = arith.addf %137, %136 : vector<8x64xf32>
    %139 = arith.mulf %128, %138 : vector<8x64xf32>
    %140 = arith.truncf %139 : vector<8x64xf32> to vector<8x64xbf16>
    %c0_59 = arith.constant 0 : index
    %c0_60 = arith.constant 0 : index
    %c0_61 = arith.constant 0 : index
    %141 = vector.load %arg13[%c0_59, %c0_60, %c0_61] : memref<2x64x32xbf16, #tpu.memory_space<vmem>>, vector<1x64x32xbf16>
    %142 = vector.shape_cast %141 : vector<1x64x32xbf16> to vector<64x32xbf16>
    %cst_62 = arith.constant dense<0.000000e+00> : vector<8x32xf32>
    %143 = tpu.matmul %140, %142, %cst_62 {dimension_numbers = #tpu.dot_dimension_numbers<[1], [0], [0], [1], [0, 0, 1, 1], [], []>} : vector<8x64xbf16>, vector<64x32xbf16>, vector<8x32xf32> -> vector<8x32xf32>
    %c0_63 = arith.constant 0 : index
    %c0_64 = arith.constant 0 : index
    %c0_65 = arith.constant 0 : index
    %144 = vector.load %arg14[%c0_63, %c0_64, %c0_65] : memref<2x1x32xf32, #tpu.memory_space<vmem>>, vector<1x1x32xf32>
    %145 = vector.shape_cast %144 : vector<1x1x32xf32> to vector<1x32xf32>
    %146 = vector.broadcast %145 : vector<1x32xf32> to vector<8x32xf32>
    %147 = arith.addf %143, %146 : vector<8x32xf32>
    %148 = arith.addf %118, %147 : vector<8x32xf32>
    %c0_66 = arith.constant 0 : index
    %c0_67 = arith.constant 0 : index
    %c0_68 = arith.constant 0 : index
    %149 = vector.load %arg15[%c0_66, %c0_67, %c0_68] : memref<2x1x32xf32, #tpu.memory_space<vmem>>, vector<1x1x32xf32>
    %150 = vector.shape_cast %149 : vector<1x1x32xf32> to vector<1x32xf32>
    %c0_69 = arith.constant 0 : index
    %c0_70 = arith.constant 0 : index
    %c0_71 = arith.constant 0 : index
    %151 = vector.load %arg16[%c0_69, %c0_70, %c0_71] : memref<2x1x32xf32, #tpu.memory_space<vmem>>, vector<1x1x32xf32>
    %152 = vector.shape_cast %151 : vector<1x1x32xf32> to vector<1x32xf32>
    %cst_72 = arith.constant dense<0.000000e+00> : vector<8xf32>
    %153 = vector.multi_reduction <add>, %148, %cst_72 [1] : vector<8x32xf32> to vector<8xf32>
    %154 = vector.shape_cast %153 : vector<8xf32> to vector<8x1xf32>
    %cst_73 = arith.constant 3.200000e+01 : f32
    %155 = vector.broadcast %cst_73 : f32 to vector<8x1xf32>
    %156 = arith.divf %154, %155 : vector<8x1xf32>
    %157 = vector.broadcast %156 : vector<8x1xf32> to vector<8x32xf32>
    %158 = arith.subf %148, %157 : vector<8x32xf32>
    %159 = arith.mulf %158, %158 : vector<8x32xf32>
    %cst_74 = arith.constant dense<0.000000e+00> : vector<8xf32>
    %160 = vector.multi_reduction <add>, %159, %cst_74 [1] : vector<8x32xf32> to vector<8xf32>
    %161 = vector.shape_cast %160 : vector<8xf32> to vector<8x1xf32>
    %cst_75 = arith.constant 3.200000e+01 : f32
    %162 = vector.broadcast %cst_75 : f32 to vector<8x1xf32>
    %163 = arith.divf %161, %162 : vector<8x1xf32>
    %164 = vector.broadcast %156 : vector<8x1xf32> to vector<8x32xf32>
    %165 = arith.subf %148, %164 : vector<8x32xf32>
    %cst_76 = arith.constant 9.99999996E-13 : f32
    %166 = vector.broadcast %cst_76 : f32 to vector<8x1xf32>
    %167 = arith.addf %163, %166 : vector<8x1xf32>
    %168 = math.rsqrt %167 : vector<8x1xf32>
    %169 = vector.broadcast %168 : vector<8x1xf32> to vector<8x32xf32>
    %170 = arith.mulf %165, %169 : vector<8x32xf32>
    %171 = vector.broadcast %150 : vector<1x32xf32> to vector<8x32xf32>
    %172 = arith.mulf %170, %171 : vector<8x32xf32>
    %173 = vector.broadcast %152 : vector<1x32xf32> to vector<8x32xf32>
    %174 = arith.addf %172, %173 : vector<8x32xf32>
    %175 = arith.truncf %174 : vector<8x32xf32> to vector<8x32xbf16>
    %c1 = arith.constant 1 : index
    %c0_77 = arith.constant 0 : index
    %c0_78 = arith.constant 0 : index
    %176 = vector.load %arg5[%c1, %c0_77, %c0_78] : memref<2x32x96xbf16, #tpu.memory_space<vmem>>, vector<1x32x96xbf16>
    %177 = vector.shape_cast %176 : vector<1x32x96xbf16> to vector<32x96xbf16>
    %cst_79 = arith.constant dense<0.000000e+00> : vector<8x96xf32>
    %178 = tpu.matmul %175, %177, %cst_79 {dimension_numbers = #tpu.dot_dimension_numbers<[1], [0], [0], [1], [0, 0, 1, 1], [], []>} : vector<8x32xbf16>, vector<32x96xbf16>, vector<8x96xf32> -> vector<8x96xf32>
    %c1_80 = arith.constant 1 : index
    %c0_81 = arith.constant 0 : index
    %c0_82 = arith.constant 0 : index
    %179 = vector.load %arg6[%c1_80, %c0_81, %c0_82] : memref<2x1x96xf32, #tpu.memory_space<vmem>>, vector<1x1x96xf32>
    %180 = vector.shape_cast %179 : vector<1x1x96xf32> to vector<1x96xf32>
    %181 = vector.broadcast %180 : vector<1x96xf32> to vector<8x96xf32>
    %182 = arith.addf %178, %181 : vector<8x96xf32>
    %183 = vector.extract_strided_slice %182 {offsets = [0, 0], sizes = [8, 16], strides = [1, 1]} : vector<8x96xf32> to vector<8x16xf32>
    %184 = arith.truncf %183 : vector<8x16xf32> to vector<8x16xbf16>
    %185 = vector.extract_strided_slice %182 {offsets = [0, 32], sizes = [8, 16], strides = [1, 1]} : vector<8x96xf32> to vector<8x16xf32>
    %186 = arith.truncf %185 : vector<8x16xf32> to vector<8x16xbf16>
    %187 = vector.extract_strided_slice %182 {offsets = [0, 64], sizes = [8, 16], strides = [1, 1]} : vector<8x96xf32> to vector<8x16xf32>
    %188 = arith.truncf %187 : vector<8x16xf32> to vector<8x16xbf16>
    %cst_83 = arith.constant dense<0.000000e+00> : vector<8x8xf32>
    %189 = tpu.matmul %184, %186, %cst_83 {dimension_numbers = #tpu.dot_dimension_numbers<[1], [1], [0], [0], [0, 0, 1, 0], [], []>} : vector<8x16xbf16>, vector<8x16xbf16>, vector<8x8xf32> -> vector<8x8xf32>
    %190 = vector.broadcast %32 : vector<1x8xf32> to vector<8x8xf32>
    %191 = arith.addf %189, %190 : vector<8x8xf32>
    %cst_84 = arith.constant dense<0xFF800000> : vector<8xf32>
    %192 = vector.multi_reduction <maximumf>, %191, %cst_84 [1] : vector<8x8xf32> to vector<8xf32>
    %193 = vector.shape_cast %192 : vector<8xf32> to vector<8x1xf32>
    %194 = vector.broadcast %193 : vector<8x1xf32> to vector<8x8xf32>
    %195 = arith.subf %191, %194 : vector<8x8xf32>
    %196 = math.exp %195 : vector<8x8xf32>
    %cst_85 = arith.constant dense<0.000000e+00> : vector<8xf32>
    %197 = vector.multi_reduction <add>, %196, %cst_85 [1] : vector<8x8xf32> to vector<8xf32>
    %198 = vector.shape_cast %197 : vector<8xf32> to vector<8x1xf32>
    %199 = tpu.reciprocal %198 {approx = true} : vector<8x1xf32> -> vector<8x1xf32>
    %200 = vector.broadcast %199 : vector<8x1xf32> to vector<8x8xf32>
    %201 = arith.mulf %196, %200 : vector<8x8xf32>
    %202 = arith.truncf %201 : vector<8x8xf32> to vector<8x8xbf16>
    %cst_86 = arith.constant dense<0.000000e+00> : vector<8x16xf32>
    %203 = tpu.matmul %202, %188, %cst_86 {dimension_numbers = #tpu.dot_dimension_numbers<[1], [0], [0], [1], [0, 0, 1, 1], [], []>} : vector<8x8xbf16>, vector<8x16xbf16>, vector<8x16xf32> -> vector<8x16xf32>
    %204 = vector.extract_strided_slice %182 {offsets = [0, 16], sizes = [8, 16], strides = [1, 1]} : vector<8x96xf32> to vector<8x16xf32>
    %205 = arith.truncf %204 : vector<8x16xf32> to vector<8x16xbf16>
    %206 = vector.extract_strided_slice %182 {offsets = [0, 48], sizes = [8, 16], strides = [1, 1]} : vector<8x96xf32> to vector<8x16xf32>
    %207 = arith.truncf %206 : vector<8x16xf32> to vector<8x16xbf16>
    %208 = vector.extract_strided_slice %182 {offsets = [0, 80], sizes = [8, 16], strides = [1, 1]} : vector<8x96xf32> to vector<8x16xf32>
    %209 = arith.truncf %208 : vector<8x16xf32> to vector<8x16xbf16>
    %cst_87 = arith.constant dense<0.000000e+00> : vector<8x8xf32>
    %210 = tpu.matmul %205, %207, %cst_87 {dimension_numbers = #tpu.dot_dimension_numbers<[1], [1], [0], [0], [0, 0, 1, 0], [], []>} : vector<8x16xbf16>, vector<8x16xbf16>, vector<8x8xf32> -> vector<8x8xf32>
    %211 = vector.broadcast %32 : vector<1x8xf32> to vector<8x8xf32>
    %212 = arith.addf %210, %211 : vector<8x8xf32>
    %cst_88 = arith.constant dense<0xFF800000> : vector<8xf32>
    %213 = vector.multi_reduction <maximumf>, %212, %cst_88 [1] : vector<8x8xf32> to vector<8xf32>
    %214 = vector.shape_cast %213 : vector<8xf32> to vector<8x1xf32>
    %215 = vector.broadcast %214 : vector<8x1xf32> to vector<8x8xf32>
    %216 = arith.subf %212, %215 : vector<8x8xf32>
    %217 = math.exp %216 : vector<8x8xf32>
    %cst_89 = arith.constant dense<0.000000e+00> : vector<8xf32>
    %218 = vector.multi_reduction <add>, %217, %cst_89 [1] : vector<8x8xf32> to vector<8xf32>
    %219 = vector.shape_cast %218 : vector<8xf32> to vector<8x1xf32>
    %220 = tpu.reciprocal %219 {approx = true} : vector<8x1xf32> -> vector<8x1xf32>
    %221 = vector.broadcast %220 : vector<8x1xf32> to vector<8x8xf32>
    %222 = arith.mulf %217, %221 : vector<8x8xf32>
    %223 = arith.truncf %222 : vector<8x8xf32> to vector<8x8xbf16>
    %cst_90 = arith.constant dense<0.000000e+00> : vector<8x16xf32>
    %224 = tpu.matmul %223, %209, %cst_90 {dimension_numbers = #tpu.dot_dimension_numbers<[1], [0], [0], [1], [0, 0, 1, 1], [], []>} : vector<8x8xbf16>, vector<8x16xbf16>, vector<8x16xf32> -> vector<8x16xf32>
    %225 = tpu.concatenate %203, %224 in 1 : vector<8x16xf32>, vector<8x16xf32> -> vector<8x32xf32>
    %226 = arith.truncf %225 : vector<8x32xf32> to vector<8x32xbf16>
    %c1_91 = arith.constant 1 : index
    %c0_92 = arith.constant 0 : index
    %c0_93 = arith.constant 0 : index
    %227 = vector.load %arg7[%c1_91, %c0_92, %c0_93] : memref<2x32x32xbf16, #tpu.memory_space<vmem>>, vector<1x32x32xbf16>
    %228 = vector.shape_cast %227 : vector<1x32x32xbf16> to vector<32x32xbf16>
    %cst_94 = arith.constant dense<0.000000e+00> : vector<8x32xf32>
    %229 = tpu.matmul %226, %228, %cst_94 {dimension_numbers = #tpu.dot_dimension_numbers<[1], [0], [0], [1], [0, 0, 1, 1], [], []>} : vector<8x32xbf16>, vector<32x32xbf16>, vector<8x32xf32> -> vector<8x32xf32>
    %c1_95 = arith.constant 1 : index
    %c0_96 = arith.constant 0 : index
    %c0_97 = arith.constant 0 : index
    %230 = vector.load %arg8[%c1_95, %c0_96, %c0_97] : memref<2x1x32xf32, #tpu.memory_space<vmem>>, vector<1x1x32xf32>
    %231 = vector.shape_cast %230 : vector<1x1x32xf32> to vector<1x32xf32>
    %232 = vector.broadcast %231 : vector<1x32xf32> to vector<8x32xf32>
    %233 = arith.addf %229, %232 : vector<8x32xf32>
    %234 = arith.addf %174, %233 : vector<8x32xf32>
    %c1_98 = arith.constant 1 : index
    %c0_99 = arith.constant 0 : index
    %c0_100 = arith.constant 0 : index
    %235 = vector.load %arg9[%c1_98, %c0_99, %c0_100] : memref<2x1x32xf32, #tpu.memory_space<vmem>>, vector<1x1x32xf32>
    %236 = vector.shape_cast %235 : vector<1x1x32xf32> to vector<1x32xf32>
    %c1_101 = arith.constant 1 : index
    %c0_102 = arith.constant 0 : index
    %c0_103 = arith.constant 0 : index
    %237 = vector.load %arg10[%c1_101, %c0_102, %c0_103] : memref<2x1x32xf32, #tpu.memory_space<vmem>>, vector<1x1x32xf32>
    %238 = vector.shape_cast %237 : vector<1x1x32xf32> to vector<1x32xf32>
    %cst_104 = arith.constant dense<0.000000e+00> : vector<8xf32>
    %239 = vector.multi_reduction <add>, %234, %cst_104 [1] : vector<8x32xf32> to vector<8xf32>
    %240 = vector.shape_cast %239 : vector<8xf32> to vector<8x1xf32>
    %cst_105 = arith.constant 3.200000e+01 : f32
    %241 = vector.broadcast %cst_105 : f32 to vector<8x1xf32>
    %242 = arith.divf %240, %241 : vector<8x1xf32>
    %243 = vector.broadcast %242 : vector<8x1xf32> to vector<8x32xf32>
    %244 = arith.subf %234, %243 : vector<8x32xf32>
    %245 = arith.mulf %244, %244 : vector<8x32xf32>
    %cst_106 = arith.constant dense<0.000000e+00> : vector<8xf32>
    %246 = vector.multi_reduction <add>, %245, %cst_106 [1] : vector<8x32xf32> to vector<8xf32>
    %247 = vector.shape_cast %246 : vector<8xf32> to vector<8x1xf32>
    %cst_107 = arith.constant 3.200000e+01 : f32
    %248 = vector.broadcast %cst_107 : f32 to vector<8x1xf32>
    %249 = arith.divf %247, %248 : vector<8x1xf32>
    %250 = vector.broadcast %242 : vector<8x1xf32> to vector<8x32xf32>
    %251 = arith.subf %234, %250 : vector<8x32xf32>
    %cst_108 = arith.constant 9.99999996E-13 : f32
    %252 = vector.broadcast %cst_108 : f32 to vector<8x1xf32>
    %253 = arith.addf %249, %252 : vector<8x1xf32>
    %254 = math.rsqrt %253 : vector<8x1xf32>
    %255 = vector.broadcast %254 : vector<8x1xf32> to vector<8x32xf32>
    %256 = arith.mulf %251, %255 : vector<8x32xf32>
    %257 = vector.broadcast %236 : vector<1x32xf32> to vector<8x32xf32>
    %258 = arith.mulf %256, %257 : vector<8x32xf32>
    %259 = vector.broadcast %238 : vector<1x32xf32> to vector<8x32xf32>
    %260 = arith.addf %258, %259 : vector<8x32xf32>
    %261 = arith.truncf %260 : vector<8x32xf32> to vector<8x32xbf16>
    %c1_109 = arith.constant 1 : index
    %c0_110 = arith.constant 0 : index
    %c0_111 = arith.constant 0 : index
    %262 = vector.load %arg11[%c1_109, %c0_110, %c0_111] : memref<2x32x64xbf16, #tpu.memory_space<vmem>>, vector<1x32x64xbf16>
    %263 = vector.shape_cast %262 : vector<1x32x64xbf16> to vector<32x64xbf16>
    %cst_112 = arith.constant dense<0.000000e+00> : vector<8x64xf32>
    %264 = tpu.matmul %261, %263, %cst_112 {dimension_numbers = #tpu.dot_dimension_numbers<[1], [0], [0], [1], [0, 0, 1, 1], [], []>} : vector<8x32xbf16>, vector<32x64xbf16>, vector<8x64xf32> -> vector<8x64xf32>
    %c1_113 = arith.constant 1 : index
    %c0_114 = arith.constant 0 : index
    %c0_115 = arith.constant 0 : index
    %265 = vector.load %arg12[%c1_113, %c0_114, %c0_115] : memref<2x1x64xf32, #tpu.memory_space<vmem>>, vector<1x1x64xf32>
    %266 = vector.shape_cast %265 : vector<1x1x64xf32> to vector<1x64xf32>
    %267 = vector.broadcast %266 : vector<1x64xf32> to vector<8x64xf32>
    %268 = arith.addf %264, %267 : vector<8x64xf32>
    %cst_116 = arith.constant 5.000000e-01 : f32
    %269 = vector.broadcast %cst_116 : f32 to vector<8x64xf32>
    %270 = arith.mulf %269, %268 : vector<8x64xf32>
    %cst_117 = arith.constant 4.471500e-02 : f32
    %271 = vector.broadcast %cst_117 : f32 to vector<8x64xf32>
    %272 = arith.mulf %271, %268 : vector<8x64xf32>
    %273 = arith.mulf %272, %268 : vector<8x64xf32>
    %274 = arith.mulf %273, %268 : vector<8x64xf32>
    %275 = arith.addf %268, %274 : vector<8x64xf32>
    %cst_118 = arith.constant 0.797884583 : f32
    %276 = vector.broadcast %cst_118 : f32 to vector<8x64xf32>
    %277 = arith.mulf %276, %275 : vector<8x64xf32>
    %278 = math.tanh %277 : vector<8x64xf32>
    %cst_119 = arith.constant 1.000000e+00 : f32
    %279 = vector.broadcast %cst_119 : f32 to vector<8x64xf32>
    %280 = arith.addf %279, %278 : vector<8x64xf32>
    %281 = arith.mulf %270, %280 : vector<8x64xf32>
    %282 = arith.truncf %281 : vector<8x64xf32> to vector<8x64xbf16>
    %c1_120 = arith.constant 1 : index
    %c0_121 = arith.constant 0 : index
    %c0_122 = arith.constant 0 : index
    %283 = vector.load %arg13[%c1_120, %c0_121, %c0_122] : memref<2x64x32xbf16, #tpu.memory_space<vmem>>, vector<1x64x32xbf16>
    %284 = vector.shape_cast %283 : vector<1x64x32xbf16> to vector<64x32xbf16>
    %cst_123 = arith.constant dense<0.000000e+00> : vector<8x32xf32>
    %285 = tpu.matmul %282, %284, %cst_123 {dimension_numbers = #tpu.dot_dimension_numbers<[1], [0], [0], [1], [0, 0, 1, 1], [], []>} : vector<8x64xbf16>, vector<64x32xbf16>, vector<8x32xf32> -> vector<8x32xf32>
    %c1_124 = arith.constant 1 : index
    %c0_125 = arith.constant 0 : index
    %c0_126 = arith.constant 0 : index
    %286 = vector.load %arg14[%c1_124, %c0_125, %c0_126] : memref<2x1x32xf32, #tpu.memory_space<vmem>>, vector<1x1x32xf32>
    %287 = vector.shape_cast %286 : vector<1x1x32xf32> to vector<1x32xf32>
    %288 = vector.broadcast %287 : vector<1x32xf32> to vector<8x32xf32>
    %289 = arith.addf %285, %288 : vector<8x32xf32>
    %290 = arith.addf %260, %289 : vector<8x32xf32>
    %c1_127 = arith.constant 1 : index
    %c0_128 = arith.constant 0 : index
    %c0_129 = arith.constant 0 : index
    %291 = vector.load %arg15[%c1_127, %c0_128, %c0_129] : memref<2x1x32xf32, #tpu.memory_space<vmem>>, vector<1x1x32xf32>
    %292 = vector.shape_cast %291 : vector<1x1x32xf32> to vector<1x32xf32>
    %c1_130 = arith.constant 1 : index
    %c0_131 = arith.constant 0 : index
    %c0_132 = arith.constant 0 : index
    %293 = vector.load %arg16[%c1_130, %c0_131, %c0_132] : memref<2x1x32xf32, #tpu.memory_space<vmem>>, vector<1x1x32xf32>
    %294 = vector.shape_cast %293 : vector<1x1x32xf32> to vector<1x32xf32>
    %cst_133 = arith.constant dense<0.000000e+00> : vector<8xf32>
    %295 = vector.multi_reduction <add>, %290, %cst_133 [1] : vector<8x32xf32> to vector<8xf32>
    %296 = vector.shape_cast %295 : vector<8xf32> to vector<8x1xf32>
    %cst_134 = arith.constant 3.200000e+01 : f32
    %297 = vector.broadcast %cst_134 : f32 to vector<8x1xf32>
    %298 = arith.divf %296, %297 : vector<8x1xf32>
    %299 = vector.broadcast %298 : vector<8x1xf32> to vector<8x32xf32>
    %300 = arith.subf %290, %299 : vector<8x32xf32>
    %301 = arith.mulf %300, %300 : vector<8x32xf32>
    %cst_135 = arith.constant dense<0.000000e+00> : vector<8xf32>
    %302 = vector.multi_reduction <add>, %301, %cst_135 [1] : vector<8x32xf32> to vector<8xf32>
    %303 = vector.shape_cast %302 : vector<8xf32> to vector<8x1xf32>
    %cst_136 = arith.constant 3.200000e+01 : f32
    %304 = vector.broadcast %cst_136 : f32 to vector<8x1xf32>
    %305 = arith.divf %303, %304 : vector<8x1xf32>
    %306 = vector.broadcast %298 : vector<8x1xf32> to vector<8x32xf32>
    %307 = arith.subf %290, %306 : vector<8x32xf32>
    %cst_137 = arith.constant 9.99999996E-13 : f32
    %308 = vector.broadcast %cst_137 : f32 to vector<8x1xf32>
    %309 = arith.addf %305, %308 : vector<8x1xf32>
    %310 = math.rsqrt %309 : vector<8x1xf32>
    %311 = vector.broadcast %310 : vector<8x1xf32> to vector<8x32xf32>
    %312 = arith.mulf %307, %311 : vector<8x32xf32>
    %313 = vector.broadcast %292 : vector<1x32xf32> to vector<8x32xf32>
    %314 = arith.mulf %312, %313 : vector<8x32xf32>
    %315 = vector.broadcast %294 : vector<1x32xf32> to vector<8x32xf32>
    %316 = arith.addf %314, %315 : vector<8x32xf32>
    %c0_138 = arith.constant 0 : index
    %c0_139 = arith.constant 0 : index
    %c0_140 = arith.constant 0 : index
    %317 = vector.load %arg17[%c0_138, %c0_139, %c0_140] : memref<1x8x32xf32, #tpu.memory_space<vmem>>, vector<1x8x32xf32>
    %318 = vector.shape_cast %317 : vector<1x8x32xf32> to vector<8x32xf32>
    %319 = vector.shape_cast %316 : vector<8x32xf32> to vector<1x8x32xf32>
    tpu.vector_store %arg17[%c0_138, %c0_139, %c0_140], %319 {strides = array<i32>} : memref<1x8x32xf32, #tpu.memory_space<vmem>>, vector<1x8x32xf32>,
    return
  }
  func.func @transform_0(%arg0: i32) -> (i32, i32, i32) {
    %c0_i32 = arith.constant 0 : i32
    %c0_i32_0 = arith.constant 0 : i32
    %c0_i32_1 = arith.constant 0 : i32
    return %arg0, %c0_i32, %c0_i32_0 : i32, i32, i32
  }
  func.func @transform_1(%arg0: i32) -> (i32, i32, i32) {
    %c0_i32 = arith.constant 0 : i32
    %c0_i32_0 = arith.constant 0 : i32
    %c0_i32_1 = arith.constant 0 : i32
    return %arg0, %c0_i32, %c0_i32_0 : i32, i32, i32
  }
  func.func @transform_2(%arg0: i32) -> (i32, i32) {
    %c0_i32 = arith.constant 0 : i32
    %c0_i32_0 = arith.constant 0 : i32
    %c0_i32_1 = arith.constant 0 : i32
    return %c0_i32, %c0_i32_0 : i32, i32
  }
  func.func @transform_3(%arg0: i32) -> (i32, i32) {
    %c0_i32 = arith.constant 0 : i32
    %c0_i32_0 = arith.constant 0 : i32
    %c0_i32_1 = arith.constant 0 : i32
    return %c0_i32, %c0_i32_0 : i32, i32
  }
  func.func @transform_4(%arg0: i32) -> (i32, i32, i32) {
    %c0_i32 = arith.constant 0 : i32
    %c0_i32_0 = arith.constant 0 : i32
    %c0_i32_1 = arith.constant 0 : i32
    %c0_i32_2 = arith.constant 0 : i32
    return %c0_i32, %c0_i32_0, %c0_i32_1 : i32, i32, i32
  }
  func.func @transform_5(%arg0: i32) -> (i32, i32, i32) {
    %c0_i32 = arith.constant 0 : i32
    %c0_i32_0 = arith.constant 0 : i32
    %c0_i32_1 = arith.constant 0 : i32
    %c0_i32_2 = arith.constant 0 : i32
    return %c0_i32, %c0_i32_0, %c0_i32_1 : i32, i32, i32
  }
  func.func @transform_6(%arg0: i32) -> (i32, i32, i32) {
    %c0_i32 = arith.constant 0 : i32
    %c0_i32_0 = arith.constant 0 : i32
    %c0_i32_1 = arith.constant 0 : i32
    %c0_i32_2 = arith.constant 0 : i32
    return %c0_i32, %c0_i32_0, %c0_i32_1 : i32, i32, i32
  }
  func.func @transform_7(%arg0: i32) -> (i32, i32, i32) {
    %c0_i32 = arith.constant 0 : i32
    %c0_i32_0 = arith.constant 0 : i32
    %c0_i32_1 = arith.constant 0 : i32
    %c0_i32_2 = arith.constant 0 : i32
    return %c0_i32, %c0_i32_0, %c0_i32_1 : i32, i32, i32
  }
  func.func @transform_8(%arg0: i32) -> (i32, i32, i32) {
    %c0_i32 = arith.constant 0 : i32
    %c0_i32_0 = arith.constant 0 : i32
    %c0_i32_1 = arith.constant 0 : i32
    %c0_i32_2 = arith.constant 0 : i32
    return %c0_i32, %c0_i32_0, %c0_i32_1 : i32, i32, i32
  }
  func.func @transform_9(%arg0: i32) -> (i32, i32, i32) {
    %c0_i32 = arith.constant 0 : i32
    %c0_i32_0 = arith.constant 0 : i32
    %c0_i32_1 = arith.constant 0 : i32
    %c0_i32_2 = arith.constant 0 : i32
    return %c0_i32, %c0_i32_0, %c0_i32_1 : i32, i32, i32
  }
  func.func @transform_10(%arg0: i32) -> (i32, i32, i32) {
    %c0_i32 = arith.constant 0 : i32
    %c0_i32_0 = arith.constant 0 : i32
    %c0_i32_1 = arith.constant 0 : i32
    %c0_i32_2 = arith.constant 0 : i32
    return %c0_i32, %c0_i32_0, %c0_i32_1 : i32, i32, i32
  }
  func.func @transform_11(%arg0: i32) -> (i32, i32, i32) {
    %c0_i32 = arith.constant 0 : i32
    %c0_i32_0 = arith.constant 0 : i32
    %c0_i32_1 = arith.constant 0 : i32
    %c0_i32_2 = arith.constant 0 : i32
    return %c0_i32, %c0_i32_0, %c0_i32_1 : i32, i32, i32
  }
  func.func @transform_12(%arg0: i32) -> (i32, i32, i32) {
    %c0_i32 = arith.constant 0 : i32
    %c0_i32_0 = arith.constant 0 : i32
    %c0_i32_1 = arith.constant 0 : i32
    %c0_i32_2 = arith.constant 0 : i32
    return %c0_i32, %c0_i32_0, %c0_i32_1 : i32, i32, i32
  }
  func.func @transform_13(%arg0: i32) -> (i32, i32, i32) {
    %c0_i32 = arith.constant 0 : i32
    %c0_i32_0 = arith.constant 0 : i32
    %c0_i32_1 = arith.constant 0 : i32
    %c0_i32_2 = arith.constant 0 : i32
    return %c0_i32, %c0_i32_0, %c0_i32_1 : i32, i32, i32
  }
  func.func @transform_14(%arg0: i32) -> (i32, i32, i32) {
    %c0_i32 = arith.constant 0 : i32
    %c0_i32_0 = arith.constant 0 : i32
    %c0_i32_1 = arith.constant 0 : i32
    %c0_i32_2 = arith.constant 0 : i32
    return %c0_i32, %c0_i32_0, %c0_i32_1 : i32, i32, i32
  }
  func.func @transform_15(%arg0: i32) -> (i32, i32, i32) {
    %c0_i32 = arith.constant 0 : i32
    %c0_i32_0 = arith.constant 0 : i32
    %c0_i32_1 = arith.constant 0 : i32
    %c0_i32_2 = arith.constant 0 : i32
    return %c0_i32, %c0_i32_0, %c0_i32_1 : i32, i32, i32
  }
  func.func @transform_16(%arg0: i32) -> (i32, i32, i32) {
    %c0_i32 = arith.constant 0 : i32
    %c0_i32_0 = arith.constant 0 : i32
    %c0_i32_1 = arith.constant 0 : i32
    return %arg0, %c0_i32, %c0_i32_0 : i32, i32, i32
  }
}

</mosaic_0001>

<bundles_post_ra>
// kernel: bert_forward.1
= control target key start
LH: loop header
LB: loop body
LE: loop exit
PB: predicated region body
PF: predicated region fallthrough
CT: control target
= control target key end

     0   :  { %s2694_s0 = inlined_call_operand.vmem [shape: f32[2,8,32], index: 0, kind: input, shape index: {}]   ;;  %s2695_s1 = inlined_call_operand.vmem [shape: s32[2,1,8], index: 1, kind: input, shape index: {}]   ;;  %s2696_s2 = inlined_call_operand.vmem [shape: f32[1,32], index: 2, kind: input, shape index: {}]   ;;  %s2697_s3 = inlined_call_operand.vmem [shape: f32[1,32], index: 3, kind: input, shape index: {}]   ;;  %s2698_s4 = inlined_call_operand.vmem [shape: bf16[2,32,96], index: 4, kind: input, shape index: {}]   ;;  %s2699_s5 = inlined_call_operand.vmem [shape: f32[2,1,96], index: 5, kind: input, shape index: {}]   ;;  %s2700_s6 = inlined_call_operand.vmem [shape: bf16[2,32,32], index: 6, kind: input, shape index: {}]   ;;  %s2701_s7 = inlined_call_operand.vmem [shape: f32[2,1,32], index: 7, kind: input, shape index: {}]   ;;  %s2702_s8 = inlined_call_operand.vmem [shape: f32[2,1,32], index: 8, kind: input, shape index: {}]   ;;  %s2703_s9 = inlined_call_operand.vmem [shape: f32[2,1,32], index: 9, kind: input, shape index: {}]   ;;  %s2704_s10 = inlined_call_operand.vmem [shape: bf16[2,32,64], index: 10, kind: input, shape index: {}]   ;;  %s2705_s11 = inlined_call_operand.vmem [shape: f32[2,1,64], index: 11, kind: input, shape index: {}]   ;;  %s2706_s12 = inlined_call_operand.vmem [shape: bf16[2,64,32], index: 12, kind: input, shape index: {}]   ;;  %s2707_s13 = inlined_call_operand.vmem [shape: f32[2,1,32], index: 13, kind: input, shape index: {}]   ;;  %s2708_s14 = inlined_call_operand.vmem [shape: f32[2,1,32], index: 14, kind: input, shape index: {}]   ;;  %s2709_s15 = inlined_call_operand.vmem [shape: f32[2,1,32], index: 15, kind: input, shape index: {}]   ;;  %s2710_s16 = inlined_call_operand.hbm [shape: f32[2,8,32], index: 16, kind: output, shape index: {}]  }
   0x1   :  { %2718 = sst [smem:[#allocation7_spill]] %s2694_s0 }
   0x2   :  { %2719 = sst [smem:[#allocation8_spill]] %s2695_s1 }
   0x3   :  { %2720 = sst [smem:[#allocation9_spill]] %s2696_s2 }
   0x4   :  { %2721 = sst [smem:[#allocation10_spill]] %s2697_s3 }
   0x5   :  { %2722 = sst [smem:[#allocation11_spill]] %s2698_s4 }
   0x6   :  { %21 = vsyncpa [#allocation3], 0 }
   0x7   :  { %23 = vsyncpa [#allocation3 + $0x1], 0  ;;  %s2340_s21 = smov 0   ;;  %s2342_s22 = smov 0  }
   0x8   :  { %s2344_s23 = smov 0   ;;  %s2346_s24 = smov 0  }
   0x9 LB: > { %2723 = sst [smem:[#allocation5_spill]] %s2240_s23  ;;  %s2361_s25 = sadd.s32 4294967295, %s2244_s24   ;;  %s2244_s24 = sphi %s2346_s24, %s2742_s24   ;;  %s2240_s23 = sphi %s2344_s23, %s2739_s23   ;;  %s2236_s22 = sphi %s2342_s22, %s2741_s22   ;;  %s2232_s21 = sphi %s2340_s21, %s2740_s21  }
   0xa   : > { %s1829_s26 = sadd.s32 4294967294, %s2244_s24   ;;  %s2365_s27 = sadd.s32 1, %s2244_s24  }
   0xb   : > { %s382_s28 = sadd.s32 1, %s2240_s23  ;;  %s379_s29 = ssub.s32 %s2244_s24, %s2365_s27 }
   0xc   : > { %p392_p0 = scmp.ne.s32.totalorder %s2240_s23, %s2236_s22  ;;  %p380_p1 = scmp.eq.s32.totalorder %s379_s29, 0 }
   0xd   : > { %p393_p2 = scmp.eq.s32.totalorder %s2361_s25, 1  ;;  %p398_p3 = scmp.ne.s32.totalorder %s2236_s22, %s2232_s21 }
   0xe   : > { %p399_p4 = scmp.eq.s32.totalorder %s1829_s26, 1  ;;  %p1832_p7 = scmp.ge.s32.totalorder %s2244_s24, 1 }
   0xf   : > { %s2376_s30 = scalar_select %p380_p1, %s2240_s23, %s382_s28  }
  0x10   : > { %p2378_p5 = por %p393_p2, %p392_p0  ;;  %p2382_p6 = por %p399_p4, %p398_p3 }
  0x11   : > { %2724 = sst [smem:[#allocation6_spill]] %s2376_s30  ;;  %p472_p8 = scmp.lt.s32.totalorder %s2244_s24, 3 }
  0x13   : > { %p473_p9 = pnand %p1832_p7, %p472_p8 }
  0x14   : > { %p524_p10 = scmp.lt.s32.totalorder (!%p473_p9), %s2361_s25, 1  ;;  %vm535_vm0 = vcmask (!%p473_p9), 261120   ;;  %s2727_s28 = sld [smem:[#allocation7_spill]] (!%p473_p9)  ;;  %v2246_v8 = vmov (!%p473_p9), 0.0   ;;  %vm2247_vm1 = vmmov (!%p473_p9), 0   ;;  %vm645_vm2 = vcmask (!%p473_p9), 130048  }
  0x15   : > { %476 = sbr.rel (%p473_p9) target bundleno = 5381 (0x1505), region = 84  ;;  %s2728_s4 = sld [smem:[#allocation11_spill]] (!%p473_p9)  ;;  %1965 = vmatprep.subr.bf16.mxu1 (!%p473_p9), %v2246_v8  ;;  %1979 = vmatprep.subr.bf16.mxu0 (!%p473_p9), %v2246_v8  ;;  %v1837_v20 = vld [vmem:[%s2699_s5] ss:$0 sm:$0xff] (!%p473_p9)  ;;  %v637_v34 = vlaneseq (!%p473_p9)  ;;  %vm692_vm3 = vcmask (!%p473_p9), 64512   ;;  %vm710_vm4 = vcmask (!%p473_p9), 1043456  }
  0x16   : > { %1969 = vmatprep.mubr.msk.bf16.mxu1 (!%p473_p9), %vm2247_vm1, %v2246_v8  ;;  %1981 = vmatprep.mubr.msk.bf16.mxu0 (!%p473_p9), %vm2247_vm1, %v2246_v8  ;;  %s2729_s2 = sld [smem:[#allocation9_spill]] (!%p473_p9)  ;;  %s2730_s3 = sld [smem:[#allocation10_spill]] (!%p473_p9)  ;;  %vm1082_vm5 = vcmask (!%p473_p9), 523264  }
  0x17   : > { %s2715_s20 = smov (!%p473_p9), 112   ;;  %s2716_s23 = smov (!%p473_p9), 96   ;;  %v638_v36 = vshrl.u32 (!%p473_p9), %v637_v34, 7 }
  0x18   : > { %s2717_s30 = smov (!%p473_p9), 80   ;;  %s2731_s1 = sld [smem:[#allocation8_spill]] (!%p473_p9) }
  0x19   : > { %v639_v38 = vsub.s32 (!%p473_p9), 0, %v638_v36  ;;  %s2735_s26 = smov (!%p473_p9), 64  }
  0x1b   : > { %v2132_v7 = vld [vmem:[%s2728_s4] sm:$0xff] (!%p473_p9)   ;;  %v2133_v9 = vld [vmem:[%s2728_s4 + $0x8] sm:$0xff] (!%p473_p9)  }
  0x1c   : > { %s2390_s18 = scalar_select %p524_p10, %s2361_s25, 1  ;;  %1966 = vmatpush3.bf16.msra.mxu1 %v2132_v7  ;;  %v1835_v14 = vld [vmem:[%s2729_s2] ss:$0 sm:$0xff] }
  0x1d   : > { %1967 = vmatprep.subr.bf16.mxu1 %v2246_v8  ;;  %v1836_v16 = vld [vmem:[%s2730_s3] ss:$0 sm:$0xff] }
  0x1e   : > { %s1834_s19 = sshll.u32 %s2390_s18, 3 }
  0x1f   : > { %s527_s29 = scalar_lea.vmem %s2727_s28, %s1834_s19  ;;  %s2713_s19 = smov 64  }
  0x20   : > { %v532_v0 = vld [vmem:[%s527_s29] sm:$0xff]  ;;  %1968 = vmatpush3.bf16.msra.mxu1 %v2133_v9  ;;  %s530_s29 = scalar_lea.vmem %s2731_s1, %s2390_s18  ;;  %s2712_s18 = smov 48  }
  0x21   : > { %v536_v1 = vsel %vm535_vm0, %v532_v0, 0.0  ;;  %1973 = vmatprep.subr.bf16.mxu1 %v2246_v8  ;;  %v564_v32 = vld [vmem:[%s530_s29] sm:$0x1]  ;;  %s2732_s28 = smov 80   ;;  %s2733_s29 = smov 96  }
  0x22   : > { %537 = vadd.xlane.f32.xlu0 %v536_v1  ;;  %v565_v33 = vcvt.s32.f32 %v564_v32 }
  0x24   : > { %v566_v35 = vsub.f32 1.0, %v565_v33 }
  0x26   : > { %v567_v37 = vmul.f32 -10000.0, %v566_v35 }
  0x28   : > { %v2445_v39 = vrot.slane %v567_v37, %v639_v38  ;;  %v2136_v38 = vld [vmem:[%s2704_s10] sm:$0xff]  }
  0xaf   : > { %v538_v2 = vpop.xlane.xlu0 %537 }
  0xb0   : > { %v540_v3 = vmul.f32 0.03125, %v538_v2 }
  0xb2   : > { %v541_v4 = vsub.f32 %v532_v0, %v540_v3 }
  0xb4   : > { %v542_v5 = vmul.f32 %v541_v4, %v541_v4 }
  0xb6   : > { %v543_v6 = vsel %vm535_vm0, %v542_v5, 0.0 }
  0xb7   : > { %544 = vadd.xlane.f32.xlu0 %v543_v6 }
 0x144   : > { %v545_v10 = vpop.xlane.xlu0 %544 }
 0x145   : > { %v546_v11 = vmul.f32 0.03125, %v545_v10 }
 0x147   : > { %v547_v12 = vadd.f32 1e-12, %v546_v11  ;;  %v2134_v11 = vld [vmem:[%s2700_s6] sm:$0xff]  }
 0x149   : > { %2152 = vrsqrt.f32 %v547_v12  ;;  %v2135_v12 = vld [vmem:[%s2700_s6 + $0x8] sm:$0xff]  }
 0x153   : > { %v2153_v13 = vpop.eup %2152 }
 0x154   : > { %v549_v15 = vmul.f32 %v2153_v13, %v541_v4 }
 0x156   : > { %v556_v17 = vmul.f32 %v1835_v14, %v549_v15 }
 0x158   : > { %v2418_v18 = vadd.f32 %v1836_v16, %v556_v17 }
 0x15a   : > { %v568_v19 = vpack.c.bf16 %v2418_v18, %v2418_v18 }
 0x15c   : > { %1970 = vmatmul.mubr.msk.bf16.vlgmr.msra.gmra.mrb[0].mxu1 %vm535_vm0, %v568_v19 }
 0x15d   : > { %1975 = vmatprep.mubr.msk.bf16.mxu1 %vm2247_vm1, %v2246_v8 }
 0x22f   : > { %v629_v21 = vpop.f32.mrb[0].mxu1 }
 0x230   : > { %v630_v22 = vadd.f32 %v1837_v20, %v629_v21  ;;  %v1971_v23 = vpop.f32.mrb[1].mxu1 }
 0x231   : > { %v632_v24 = vpop.f32.mrb[2].mxu1 }
 0x232   : > { %v635_v25 = vpack.c.bf16 %v630_v22, %v630_v22  ;;  %v1972_v26 = vpop.f32.mrb[3].mxu1 }
 0x234   : > { %754 = vrot.lane.b32.xlu0 %v635_v25, %s2715_s20  ;;  %643 = vrot.lane.b32.xlu1 %v635_v25, %s2716_s23  ;;  %s2736_s23 = smov 48   ;;  %s1918_s20 = sshll.u32 %s2361_s25, 7 }
 0x235   : > { %s2254_s25 = smov [#allocation2]  }
 0x238   : > { %756 = vrot.lane.b32.xlu1 %v635_v25, %s2717_s30 }
 0x2a6   : > { %v644_v27 = vpop.permute.xlu1 %643  ;;  %v755_v31 = vpop.permute.xlu0 %754 }
 0x2a7   : > { %v650_v28 = vsel %vm645_vm2, %v644_v27, 0 }
 0x2a8   : > { %1974 = vmatpush3.bf16.xpose.msra.mxu1 %v650_v28 }
 0x2a9   : > { %1985 = vmatprep.subr.bf16.mxu1 %v2246_v8 }
 0x2aa   : > { %v757_v29 = vpop.permute.xlu1 %756 }
 0x2ab   : > { %v762_v30 = vsel %vm645_vm2, %v757_v29, 0 }
 0x2af   : > { %1976 = vmatmul.mubr.msk.bf16.vlgmr.msra.gmra.mrb[4].mxu1 %vm645_vm2, %v635_v25 }
 0x2b0   : > { %1986 = vmatpush3.bf16.xpose.msra.mxu1 %v762_v30  ;;  %1987 = vmatprep.mubr.msk.bf16.mxu1 %vm2247_vm1, %v2246_v8 }
 0x2b1   : > { %1997 = vmatprep.subr.bf16.mxu1 %v2246_v8 }
 0x2b7   : > { %1988 = vmatmul.mubr.msk.bf16.vlgmr.msra.gmra.mrb[8].mxu1 %vm645_vm2, %v755_v31 }
 0x2b8   : > { %2001 = vmatprep.mubr.msk.bf16.mxu1 %vm2247_vm1, %v2246_v8  ;;  %1998 = vmatpush3.bf16.msra.mxu1 %v2134_v11 }
 0x2b9   : > { %1999 = vmatprep.subr.bf16.mxu1 %v2246_v8 }
 0x2bc   : > { %2000 = vmatpush3.bf16.msra.mxu1 %v2135_v12 }
 0x2bd   : > { %2013 = vmatprep.subr.bf16.mxu1 %v2246_v8 }
 0x382   : > { %v686_v40 = vpop.f32.mrb[4].mxu1 }
 0x383   : > { %v687_v41 = vadd.f32 %v686_v40, %v2445_v39  ;;  %v1977_v42 = vpop.f32.mrb[5].mxu1 }
 0x384   : > { %v689_v43 = vpop.f32.mrb[6].mxu1 }
 0x385   : > { %v1978_v44 = vpop.f32.mrb[7].mxu1  ;;  %v693_v45 = vsel %vm692_vm3, %v687_v41, -inf }
 0x386   : > { %694 = vmax.xlane.f32.xlu1 %v693_v45  ;;  %v1849_v44 = vld [vmem:[%s2702_s8] ss:$0 sm:$0xff] }
 0x38a   : > { %v798_v46 = vpop.f32.mrb[8].mxu1 }
 0x38b   : > { %v799_v47 = vadd.f32 %v798_v46, %v2445_v39  ;;  %v1989_v48 = vpop.f32.mrb[9].mxu1  ;;  %v1850_v46 = vld [vmem:[%s2703_s9] ss:$0 sm:$0xff] }
 0x38c   : > { %v801_v49 = vpop.f32.mrb[10].mxu1 }
 0x38d   : > { %v1990_v50 = vpop.f32.mrb[11].mxu1  ;;  %v804_v51 = vsel %vm692_vm3, %v799_v47, -inf }
 0x38e   : > { %805 = vmax.xlane.f32.xlu0 %v804_v51  ;;  %v2138_v50 = vld [vmem:[%s2706_s12] sm:$0xff]   ;;  %v2139_v51 = vld [vmem:[%s2706_s12 + $0x8] sm:$0xff]  }
 0x3a4   : > { %816 = vrot.lane.b32.xlu0 %v635_v25, %s2712_s18  ;;  %s2734_s18 = smov 112  }
 0x413   : > { %v695_v52 = vpop.xlane.xlu1 %694 }
 0x414   : > { %v696_v53 = vsub.f32 %v687_v41, %v695_v52  ;;  %v2140_v52 = vld [vmem:[%s2706_s12 + $0x10] sm:$0xff]  }
 0x416   : > { %v697_v54 = vmul.f32 1.442695, %v696_v53  ;;  %v2141_v53 = vld [vmem:[%s2706_s12 + $0x18] sm:$0xff]  }
 0x418   : > { %2154 = vpow2.f32 %v697_v54  ;;  %v1851_v54 = vld [vmem:[%s2705_s11] ss:$0 sm:$0xff] }
 0x41b   : > { %v806_v55 = vpop.xlane.xlu0 %805 }
 0x41c   : > { %v807_v56 = vsub.f32 %v799_v47, %v806_v55 }
 0x41e   : > { %v808_v57 = vmul.f32 1.442695, %v807_v56 }
 0x41f   : > { %v817_v4 = vpop.permute.xlu0 %816 }
 0x420   : > { %2156 = vpow2.f32 %v808_v57  ;;  %v822_v6 = vsel %vm710_vm4, %v817_v4, 0 }
 0x422   : > { %v2155_v58 = vpop.eup %2154 }
 0x423   : > { %v699_v59 = vsel %vm692_vm3, %v2155_v58, 0.0 }
 0x424   : > { %700 = vadd.xlane.f32.xlu1 %v699_v59 }
 0x42a   : > { %v2157_v60 = vpop.eup %2156 }
 0x42b   : > { %v810_v61 = vsel %vm692_vm3, %v2157_v60, 0.0 }
 0x42c   : > { %811 = vadd.xlane.f32.xlu1 %v810_v61 }
 0x43d   : > { %705 = vrot.lane.b32.xlu1 %v635_v25, %s2713_s19  ;;  %s2714_s19 = smov 16   ;;  %v1845_v25 = vld [vmem:[%s2701_s7] ss:$0 sm:$0xff] }
 0x4b1   : > { %v701_v62 = vpop.xlane.xlu1 %700 }
 0x4b2   : > { %2158 = vrcp.f32 %v701_v62 }
 0x4b9   : > { %v812_v63 = vpop.xlane.xlu1 %811 }
 0x4ba   : > { %2160 = vrcp.f32 %v812_v63 }
 0x4bc   : > { %v2159_v0 = vpop.eup %2158 }
 0x4bd   : > { %v706_v1 = vpop.permute.xlu1 %705  ;;  %v703_v2 = vmul.f32 %v2159_v0, %v2155_v58 }
 0x4be   : > { %v712_v3 = vsel %vm710_vm4, %v706_v1, 0 }
 0x4bf   : > { %1980 = vmatpush3.bf16.msra.mxu0 %v712_v3  ;;  %v704_v5 = vpack.c.bf16 %v703_v2, %v703_v2 }
 0x4c0   : > { %1991 = vmatprep.subr.bf16.mxu0 %v2246_v8 }
 0x4c2   : > { %1982 = vmatmul.mubr.msk.bf16.vlgmr.msra.gmra.mrb[0].mxu0 %vm692_vm3, %v704_v5 }
 0x4c3   : > { %1992 = vmatpush3.bf16.msra.mxu0 %v822_v6  ;;  %1993 = vmatprep.mubr.msk.bf16.mxu0 %vm2247_vm1, %v2246_v8  ;;  %v1855_v6 = vld [vmem:[%s2707_s13] ss:$0 sm:$0xff] }
 0x4c4   : > { %v2161_v7 = vpop.eup %2160  ;;  %2005 = vmatprep.subr.bf16.mxu0 %v2246_v8 }
 0x4c5   : > { %v814_v9 = vmul.f32 %v2161_v7, %v2157_v60 }
 0x4c7   : > { %v815_v10 = vpack.c.bf16 %v814_v9, %v814_v9 }
 0x4ca   : > { %1994 = vmatmul.mubr.msk.bf16.vlgmr.msra.gmra.mrb[4].mxu0 %vm692_vm3, %v815_v10 }
 0x4cb   : > { %2009 = vmatprep.mubr.msk.bf16.mxu0 %vm2247_vm1, %v2246_v8  ;;  %2006 = vmatpush3.bf16.msra.mxu0 %v2136_v38 }
 0x4cc   : > { %2007 = vmatprep.subr.bf16.mxu0 %v2246_v8 }
 0x595   : > { %v748_v13 = vpop.f32.mrb[0].mxu0 }
 0x596   : > { %v1983_v14 = vpop.f32.mrb[1].mxu0 }
 0x597   : > { %v751_v15 = vpop.f32.mrb[2].mxu0 }
 0x598   : > { %v1984_v16 = vpop.f32.mrb[3].mxu0 }
 0x59d   : > { %v858_v17 = vpop.f32.mrb[4].mxu0 }
 0x59e   : > { %865 = vrot.lane.b32.xlu1 %v858_v17, %s2714_s19  ;;  %v1995_v19 = vpop.f32.mrb[5].mxu0 }
 0x59f   : > { %v861_v20 = vpop.f32.mrb[6].mxu0 }
 0x5a0   : > { %v1996_v21 = vpop.f32.mrb[7].mxu0 }
 0x5a1   : > { %v2142_v21 = vld [vmem:[%s2728_s4 + $0x10] sm:$0xff]  }
 0x610   : > { %v866_v22 = vpop.permute.xlu1 %865 }
 0x611   : > { %v868_v23 = vsel %vm645_vm2, %v748_v13, %v866_v22  ;;  %v2143_v22 = vld [vmem:[%s2728_s4 + $0x18] sm:$0xff]   ;;  %s2651_s4 = scalar_lea.hbm %s2710_s16, %s1918_s20 }
 0x612   : > { %v869_v24 = vpack.c.bf16 %v868_v23, %v868_v23 }
 0x614   : > { %2002 = vmatmul.mubr.msk.bf16.vlgmr.msra.gmra.mrb[12].mxu1 %vm535_vm0, %v869_v24 }
 0x615   : > { %2021 = vmatprep.mubr.msk.bf16.mxu1 %vm2247_vm1, %v2246_v8  ;;  %2014 = vmatpush3.bf16.msra.mxu1 %v2138_v50 }
 0x616   : > { %2015 = vmatprep.subr.bf16.mxu1 %v2246_v8 }
 0x619   : > { %2016 = vmatpush3.bf16.msra.mxu1 %v2139_v51 }
 0x61a   : > { %2017 = vmatprep.subr.bf16.mxu1 %v2246_v8 }
 0x61d   : > { %2018 = vmatpush3.bf16.msra.mxu1 %v2140_v52 }
 0x61e   : > { %2019 = vmatprep.subr.bf16.mxu1 %v2246_v8 }
 0x621   : > { %2020 = vmatpush3.bf16.msra.mxu1 %v2141_v53 }
 0x622   : > { %2039 = vmatprep.subr.bf16.mxu1 %v2246_v8 }
 0x6e7   : > { %v930_v26 = vpop.f32.mrb[12].mxu1 }
 0x6e8   : > { %v931_v27 = vadd.f32 %v1845_v25, %v930_v26  ;;  %v2003_v28 = vpop.f32.mrb[13].mxu1 }
 0x6e9   : > { %v933_v29 = vpop.f32.mrb[14].mxu1 }
 0x6ea   : > { %v2004_v30 = vpop.f32.mrb[15].mxu1  ;;  %v936_v31 = vadd.f32 %v931_v27, %v2418_v18  ;;  %v2137_v18 = vld [vmem:[%s2704_s10 + $0x8] sm:$0xff]   ;;  %v1861_v27 = vld [vmem:[%s2708_s14] ss:$0 sm:$0xff] }
 0x6eb   : > { %2008 = vmatpush3.bf16.msra.mxu0 %v2137_v18  ;;  %v1862_v29 = vld [vmem:[%s2709_s15] ss:$0 sm:$0xff] }
 0x6ec   : > { %v939_v32 = vsel %vm535_vm0, %v936_v31, 0.0  ;;  %2025 = vmatprep.subr.bf16.mxu0 %v2246_v8 }
 0x6ed   : > { %940 = vadd.xlane.f32.xlu1 %v939_v32 }
 0x77a   : > { %v941_v33 = vpop.xlane.xlu1 %940 }
 0x77b   : > { %v942_v34 = vmul.f32 0.03125, %v941_v33  ;;  %v1868_v33 = vld [vmem:[%s2699_s5 + $0x1] ss:$0 sm:$0xff] }
 0x77d   : > { %v943_v35 = vsub.f32 %v936_v31, %v942_v34 }
 0x77f   : > { %v944_v36 = vmul.f32 %v943_v35, %v943_v35 }
 0x781   : > { %v945_v37 = vsel %vm535_vm0, %v944_v36, 0.0 }
 0x782   : > { %946 = vadd.xlane.f32.xlu0 %v945_v37 }
 0x80f   : > { %v947_v40 = vpop.xlane.xlu0 %946 }
 0x810   : > { %v948_v41 = vmul.f32 0.03125, %v947_v40 }
 0x812   : > { %v949_v42 = vadd.f32 1e-12, %v948_v41 }
 0x814   : > { %2162 = vrsqrt.f32 %v949_v42 }
 0x81e   : > { %v2163_v43 = vpop.eup %2162 }
 0x81f   : > { %v951_v45 = vmul.f32 %v2163_v43, %v943_v35 }
 0x821   : > { %v958_v47 = vmul.f32 %v1849_v44, %v951_v45 }
 0x823   : > { %v965_v48 = vadd.f32 %v1850_v46, %v958_v47 }
 0x825   : > { %v966_v49 = vpack.c.bf16 %v965_v48, %v965_v48 }
 0x827   : > { %2010 = vmatmul.mubr.msk.bf16.vlgmr.msra.gmra.mrb[8].mxu0 %vm535_vm0, %v966_v49 }
 0x828   : > { %2029 = vmatprep.mubr.msk.bf16.mxu0 %vm2247_vm1, %v2246_v8  ;;  %2026 = vmatpush3.bf16.msra.mxu0 %v2142_v21 }
 0x829   : > { %2027 = vmatprep.subr.bf16.mxu0 %v2246_v8 }
 0x82c   : > { %2028 = vmatpush3.bf16.msra.mxu0 %v2143_v22 }
 0x82d   : > { %2033 = vmatprep.subr.bf16.mxu0 %v2246_v8 }
 0x8fa   : > { %v1027_v55 = vpop.f32.mrb[8].mxu0 }
 0x8fb   : > { %v1028_v56 = vadd.f32 %v1851_v54, %v1027_v55  ;;  %v2011_v57 = vpop.f32.mrb[9].mxu0 }
 0x8fc   : > { %v1030_v58 = vpop.f32.mrb[10].mxu0 }
 0x8fd   : > { %v1034_v59 = vmul.f32 0.044715, %v1028_v56  ;;  %v2012_v60 = vpop.f32.mrb[11].mxu0  ;;  %v1033_v2 = vmul.f32 0.5, %v1028_v56 }
 0x8ff   : > { %v1035_v61 = vmul.f32 %v1034_v59, %v1028_v56 }
 0x901   : > { %v1036_v62 = vmul.f32 %v1035_v61, %v1028_v56 }
 0x903   : > { %v1037_v63 = vadd.f32 %v1036_v62, %v1028_v56 }
 0x905   : > { %v1038_v0 = vmul.f32 0.7978846, %v1037_v63 }
 0x907   : > { %2164 = vtanh.f32 %v1038_v0 }
 0x911   : > { %v2165_v1 = vpop.eup %2164 }
 0x912   : > { %v1040_v3 = vadd.f32 1.0, %v2165_v1 }
 0x914   : > { %v1041_v4 = vmul.f32 %v1040_v3, %v1033_v2 }
 0x916   : > { %v1042_v5 = vpack.c.bf16 %v1041_v4, %v1041_v4 }
 0x918   : > { %2022 = vmatmul.mubr.msk.bf16.vlgmr.msra.gmra.mrb[16].mxu1 %vm1082_vm5, %v1042_v5 }
 0x919   : > { %2041 = vmatprep.mubr.msk.bf16.mxu1 %vm2247_vm1, %v2246_v8 }
 0x9eb   : > { %v1120_v7 = vpop.f32.mrb[16].mxu1 }
 0x9ec   : > { %v1121_v9 = vadd.f32 %v1855_v6, %v1120_v7  ;;  %v2023_v10 = vpop.f32.mrb[17].mxu1 }
 0x9ed   : > { %v1123_v11 = vpop.f32.mrb[18].mxu1 }
 0x9ee   : > { %v2024_v12 = vpop.f32.mrb[19].mxu1  ;;  %v1126_v13 = vadd.f32 %v1121_v9, %v965_v48 }
 0x9f0   : > { %v1129_v14 = vsel %vm535_vm0, %v1126_v13, 0.0 }
 0x9f1   : > { %1130 = vadd.xlane.f32.xlu1 %v1129_v14 }
 0xa7e   : > { %v1131_v15 = vpop.xlane.xlu1 %1130 }
 0xa7f   : > { %v1132_v16 = vmul.f32 0.03125, %v1131_v15  ;;  %v2144_v15 = vld [vmem:[%s2700_s6 + $0x10] sm:$0xff]  }
 0xa81   : > { %v1133_v17 = vsub.f32 %v1126_v13, %v1132_v16  ;;  %v2145_v16 = vld [vmem:[%s2700_s6 + $0x18] sm:$0xff]  }
 0xa83   : > { %v1134_v19 = vmul.f32 %v1133_v17, %v1133_v17 }
 0xa85   : > { %v1135_v20 = vsel %vm535_vm0, %v1134_v19, 0.0 }
 0xa86   : > { %1136 = vadd.xlane.f32.xlu1 %v1135_v20 }
 0xb13   : > { %v1137_v23 = vpop.xlane.xlu1 %1136 }
 0xb14   : > { %v1138_v24 = vmul.f32 0.03125, %v1137_v23 }
 0xb16   : > { %v1139_v25 = vadd.f32 1e-12, %v1138_v24 }
 0xb18   : > { %2166 = vrsqrt.f32 %v1139_v25 }
 0xb22   : > { %v2167_v26 = vpop.eup %2166 }
 0xb23   : > { %v1141_v28 = vmul.f32 %v2167_v26, %v1133_v17 }
 0xb25   : > { %v1148_v30 = vmul.f32 %v1861_v27, %v1141_v28 }
 0xb27   : > { %v2542_v31 = vadd.f32 %v1862_v29, %v1148_v30  ;;  %v1881_v29 = vld [vmem:[%s2701_s7 + $0x1] ss:$0 sm:$0xff] }
 0xb29   : > { %v1156_v32 = vpack.c.bf16 %v2542_v31, %v2542_v31 }
 0xb2b   : > { %2030 = vmatmul.mubr.msk.bf16.vlgmr.msra.gmra.mrb[12].mxu0 %vm535_vm0, %v1156_v32 }
 0xb2c   : > { %2035 = vmatprep.mubr.msk.bf16.mxu0 %vm2247_vm1, %v2246_v8 }
 0xbfe   : > { %v1219_v34 = vpop.f32.mrb[12].mxu0 }
 0xbff   : > { %v1220_v35 = vadd.f32 %v1868_v33, %v1219_v34  ;;  %v2031_v36 = vpop.f32.mrb[13].mxu0 }
 0xc00   : > { %v1222_v37 = vpop.f32.mrb[14].mxu0 }
 0xc01   : > { %v1225_v38 = vpack.c.bf16 %v1220_v35, %v1220_v35  ;;  %v2032_v18 = vpop.f32.mrb[15].mxu0 }
 0xc03   : > { %1337 = vrot.lane.b32.xlu1 %v1225_v38, %s2732_s28  ;;  %1227 = vrot.lane.b32.xlu0 %v1225_v38, %s2733_s29  ;;  %s2737_s29 = smov 16   ;;  %s521_s28 = sand.u32 1, %s2236_s22  }
 0xc07   : > { %1335 = vrot.lane.b32.xlu1 %v1225_v38, %s2734_s18  ;;  %s1748_s18 = scalar_lea.sflag [#allocation3], %s521_s28 }
 0xc75   : > { %v1228_v40 = vpop.permute.xlu0 %1227  ;;  %v1338_v42 = vpop.permute.xlu1 %1337 }
 0xc76   : > { %v1233_v41 = vsel %vm645_vm2, %v1228_v40, 0  ;;  %v1343_v43 = vsel %vm645_vm2, %v1338_v42, 0 }
 0xc77   : > { %2034 = vmatpush3.bf16.xpose.msra.mxu0 %v1233_v41 }
 0xc78   : > { %2045 = vmatprep.subr.bf16.mxu0 %v2246_v8 }
 0xc79   : > { %v1336_v44 = vpop.permute.xlu1 %1335 }
 0xc7e   : > { %2036 = vmatmul.mubr.msk.bf16.vlgmr.msra.gmra.mrb[16].mxu0 %vm645_vm2, %v1225_v38 }
 0xc7f   : > { %2046 = vmatpush3.bf16.xpose.msra.mxu0 %v1343_v43  ;;  %2047 = vmatprep.mubr.msk.bf16.mxu0 %vm2247_vm1, %v2246_v8  ;;  %v2146_v43 = vld [vmem:[%s2704_s10 + $0x10] sm:$0xff]  }
 0xc80   : > { %2057 = vmatprep.subr.bf16.mxu0 %v2246_v8 }
 0xc86   : > { %2048 = vmatmul.mubr.msk.bf16.vlgmr.msra.gmra.mrb[20].mxu0 %vm645_vm2, %v1336_v44  ;;  %v2147_v44 = vld [vmem:[%s2704_s10 + $0x18] sm:$0xff]  }
 0xc87   : > { %2061 = vmatprep.mubr.msk.bf16.mxu0 %vm2247_vm1, %v2246_v8  ;;  %2058 = vmatpush3.bf16.msra.mxu0 %v2144_v15 }
 0xc88   : > { %2059 = vmatprep.subr.bf16.mxu0 %v2246_v8 }
 0xc8b   : > { %2060 = vmatpush3.bf16.msra.mxu0 %v2145_v16 }
 0xc8c   : > { %2073 = vmatprep.subr.bf16.mxu0 %v2246_v8 }
 0xd51   : > { %v1269_v45 = vpop.f32.mrb[16].mxu0 }
 0xd52   : > { %v1270_v46 = vadd.f32 %v1269_v45, %v2445_v39  ;;  %v2037_v47 = vpop.f32.mrb[17].mxu0 }
 0xd53   : > { %v1272_v48 = vpop.f32.mrb[18].mxu0 }
 0xd54   : > { %v2038_v49 = vpop.f32.mrb[19].mxu0  ;;  %v1275_v50 = vsel %vm692_vm3, %v1270_v46, -inf  ;;  %v1887_v48 = vld [vmem:[%s2702_s8 + $0x1] ss:$0 sm:$0xff] }
 0xd55   : > { %1276 = vmax.xlane.f32.xlu0 %v1275_v50  ;;  %v1888_v50 = vld [vmem:[%s2703_s9 + $0x1] ss:$0 sm:$0xff] }
 0xd59   : > { %v1379_v51 = vpop.f32.mrb[20].mxu0 }
 0xd5a   : > { %v1380_v52 = vadd.f32 %v1379_v51, %v2445_v39  ;;  %v2049_v53 = vpop.f32.mrb[21].mxu0 }
 0xd5b   : > { %v1382_v54 = vpop.f32.mrb[22].mxu0 }
 0xd5c   : > { %v2050_v55 = vpop.f32.mrb[23].mxu0  ;;  %v1385_v56 = vsel %vm692_vm3, %v1380_v52, -inf  ;;  %v2148_v54 = vld [vmem:[%s2706_s12 + $0x20] sm:$0xff]  }
 0xd5d   : > { %1386 = vmax.xlane.f32.xlu1 %v1385_v56  ;;  %v2149_v55 = vld [vmem:[%s2706_s12 + $0x28] sm:$0xff]   ;;  %v2150_v56 = vld [vmem:[%s2706_s12 + $0x30] sm:$0xff]  }
 0xd6e   : > { %1287 = vrot.lane.b32.xlu1 %v1225_v38, %s2735_s26 }
 0xde2   : > { %v1277_v57 = vpop.xlane.xlu0 %1276 }
 0xde3   : > { %v1278_v58 = vsub.f32 %v1270_v46, %v1277_v57  ;;  %v2151_v57 = vld [vmem:[%s2706_s12 + $0x38] sm:$0xff]  }
 0xde5   : > { %v1279_v59 = vmul.f32 1.442695, %v1278_v58  ;;  %v1894_v58 = vld [vmem:[%s2705_s11 + $0x1] ss:$0 sm:$0xff] }
 0xde7   : > { %2168 = vpow2.f32 %v1279_v59 }
 0xdea   : > { %v1387_v60 = vpop.xlane.xlu1 %1386 }
 0xdeb   : > { %v1388_v61 = vsub.f32 %v1380_v52, %v1387_v60 }
 0xded   : > { %v1389_v62 = vmul.f32 1.442695, %v1388_v61 }
 0xdee   : > { %v1288_v63 = vpop.permute.xlu1 %1287 }
 0xdef   : > { %2170 = vpow2.f32 %v1389_v62  ;;  %v1293_v0 = vsel %vm710_vm4, %v1288_v63, 0 }
 0xdf0   : > { %2040 = vmatpush3.bf16.msra.mxu1 %v1293_v0 }
 0xdf1   : > { %v2169_v39 = vpop.eup %2168  ;;  %2051 = vmatprep.subr.bf16.mxu1 %v2246_v8 }
 0xdf2   : > { %v1281_v1 = vsel %vm692_vm3, %v2169_v39, 0.0 }
 0xdf3   : > { %1282 = vadd.xlane.f32.xlu0 %v1281_v1 }
 0xdf9   : > { %v2171_v2 = vpop.eup %2170 }
 0xdfa   : > { %v1391_v3 = vsel %vm692_vm3, %v2171_v2, 0.0 }
 0xdfb   : > { %1392 = vadd.xlane.f32.xlu0 %v1391_v3 }
 0xe11   : > { %1397 = vrot.lane.b32.xlu0 %v1225_v38, %s2736_s23 }
 0xe80   : > { %v1283_v4 = vpop.xlane.xlu0 %1282 }
 0xe81   : > { %2172 = vrcp.f32 %v1283_v4 }
 0xe88   : > { %v1393_v5 = vpop.xlane.xlu0 %1392 }
 0xe89   : > { %2174 = vrcp.f32 %v1393_v5 }
 0xe8b   : > { %v2173_v6 = vpop.eup %2172 }
 0xe8c   : > { %v1285_v7 = vmul.f32 %v2173_v6, %v2169_v39  ;;  %v1398_v9 = vpop.permute.xlu0 %1397 }
 0xe8d   : > { %v1403_v11 = vsel %vm710_vm4, %v1398_v9, 0  ;;  %v1907_v9 = vld [vmem:[%s2707_s13 + $0x1] ss:$0 sm:$0xff] }
 0xe8e   : > { %v1286_v10 = vpack.c.bf16 %v1285_v7, %v1285_v7 }
 0xe90   : > { %2042 = vmatmul.mubr.msk.bf16.vlgmr.msra.gmra.mrb[20].mxu1 %vm692_vm3, %v1286_v10 }
 0xe91   : > { %2052 = vmatpush3.bf16.msra.mxu1 %v1403_v11  ;;  %2053 = vmatprep.mubr.msk.bf16.mxu1 %vm2247_vm1, %v2246_v8 }
 0xe92   : > { %2065 = vmatprep.subr.bf16.mxu1 %v2246_v8 }
 0xe93   : > { %v2175_v12 = vpop.eup %2174 }
 0xe94   : > { %v1395_v13 = vmul.f32 %v2175_v12, %v2171_v2 }
 0xe96   : > { %v1396_v14 = vpack.c.bf16 %v1395_v13, %v1395_v13 }
 0xe98   : > { %2054 = vmatmul.mubr.msk.bf16.vlgmr.msra.gmra.mrb[24].mxu1 %vm692_vm3, %v1396_v14 }
 0xe99   : > { %2069 = vmatprep.mubr.msk.bf16.mxu1 %vm2247_vm1, %v2246_v8  ;;  %2066 = vmatpush3.bf16.msra.mxu1 %v2146_v43 }
 0xe9a   : > { %2067 = vmatprep.subr.bf16.mxu1 %v2246_v8 }
 0xe9d   : > { %2068 = vmatpush3.bf16.msra.mxu1 %v2147_v44 }
 0xf63   : > { %v1329_v17 = vpop.f32.mrb[20].mxu1 }
 0xf64   : > { %v2043_v19 = vpop.f32.mrb[21].mxu1 }
 0xf65   : > { %v1332_v20 = vpop.f32.mrb[22].mxu1 }
 0xf66   : > { %v2044_v21 = vpop.f32.mrb[23].mxu1 }
 0xf6b   : > { %v1439_v22 = vpop.f32.mrb[24].mxu1 }
 0xf6c   : > { %1446 = vrot.lane.b32.xlu1 %v1439_v22, %s2737_s29  ;;  %v2055_v23 = vpop.f32.mrb[25].mxu1  ;;  %s1833_s29 = sshll.u32 %s521_s28, 3 }
 0xf6d   : > { %v1442_v24 = vpop.f32.mrb[26].mxu1  ;;  %s523_s19 = scalar_lea.vmem [#allocation2], %s1833_s29  ;;  %s2186_s29 = sshll.u32 %s2254_s25, 4  ;;  %s2187_s29 = int_to_ptr.vmem [resolvable:$false] %s2186_s29 }
 0xf6e   : > { %v2056_v25 = vpop.f32.mrb[27].mxu1  ;;  %s1761_s1 = sshll.u32 %s523_s19, 4  ;;  %s2188_s23 = scalar_lea.vmem %s2187_s29, 256  ;;  %s2653_s1 = int_to_ptr.vmem [resolvable:$true] %s1761_s1 }
 0xf6f   : > { %s2182_s26 = scalar_lea.vmem %s2653_s1, 128  ;;  %p2189_p0 = scmp.lt.s32.totalorder %s2653_s1, %s2187_s29 }
 0xf70   : > { %p2183_p11 = scmp.ne.s32.totalorder %s2653_s1, %s2182_s26  ;;  %p2190_p1 = scmp.lt.s32.totalorder %s2188_s23, %s2182_s26 }
 0xf72   : > { %p2184_p12 = pnand %p2183_p11, %p2378_p5  ;;  %p2191_p2 = por %p2190_p1, %p2189_p0 }
 0xf74   : > { %p2185_p13 = pneg %p2184_p12 }
 0xf76   : > { %p2192_p3 = pnand %p2191_p2, %p2185_p13 }
 0xfde   : > { %v1447_v26 = vpop.permute.xlu1 %1446 }
 0xfdf   : > { %v1449_v27 = vsel %vm645_vm2, %v1329_v17, %v1447_v26 }
 0xfe0   : > { %v1450_v28 = vpack.c.bf16 %v1449_v27, %v1449_v27  ;;  %v1915_v27 = vld [vmem:[%s2708_s14 + $0x1] ss:$0 sm:$0xff] }
 0xfe2   : > { %2062 = vmatmul.mubr.msk.bf16.vlgmr.msra.gmra.mrb[24].mxu0 %vm535_vm0, %v1450_v28 }
 0xfe3   : > { %2081 = vmatprep.mubr.msk.bf16.mxu0 %vm2247_vm1, %v2246_v8  ;;  %2074 = vmatpush3.bf16.msra.mxu0 %v2148_v54 }
 0xfe4   : > { %2075 = vmatprep.subr.bf16.mxu0 %v2246_v8 }
 0xfe7   : > { %2076 = vmatpush3.bf16.msra.mxu0 %v2149_v55 }
 0xfe8   : > { %2077 = vmatprep.subr.bf16.mxu0 %v2246_v8 }
 0xfeb   : > { %2078 = vmatpush3.bf16.msra.mxu0 %v2150_v56 }
 0xfec   : > { %2079 = vmatprep.subr.bf16.mxu0 %v2246_v8 }
 0xfef   : > { %2080 = vmatpush3.bf16.msra.mxu0 %v2151_v57 }
0x10b5   : > { %v1513_v30 = vpop.f32.mrb[24].mxu0 }
0x10b6   : > { %v1514_v32 = vadd.f32 %v1881_v29, %v1513_v30  ;;  %v2063_v33 = vpop.f32.mrb[25].mxu0  ;;  %v1916_v29 = vld [vmem:[%s2709_s15 + $0x1] ss:$0 sm:$0xff] }
0x10b7   : > { %v1516_v34 = vpop.f32.mrb[26].mxu0 }
0x10b8   : > { %v2064_v35 = vpop.f32.mrb[27].mxu0  ;;  %v1519_v36 = vadd.f32 %v1514_v32, %v2542_v31 }
0x10ba   : > { %v1524_v37 = vsel %vm535_vm0, %v1519_v36, 0.0 }
0x10bb   : > { %1525 = vadd.xlane.f32.xlu1 %v1524_v37 }
0x1148   : > { %v1526_v38 = vpop.xlane.xlu1 %1525 }
0x1149   : > { %v1527_v18 = vmul.f32 0.03125, %v1526_v38 }
0x114b   : > { %v1528_v40 = vsub.f32 %v1519_v36, %v1527_v18 }
0x114d   : > { %v1529_v41 = vmul.f32 %v1528_v40, %v1528_v40 }
0x114f   : > { %v1530_v42 = vsel %vm535_vm0, %v1529_v41, 0.0 }
0x1150   : > { %1531 = vadd.xlane.f32.xlu0 %v1530_v42 }
0x11dd   : > { %v1532_v31 = vpop.xlane.xlu0 %1531 }
0x11de   : > { %v1533_v45 = vmul.f32 0.03125, %v1532_v31 }
0x11e0   : > { %v1534_v46 = vadd.f32 1e-12, %v1533_v45 }
0x11e2   : > { %2176 = vrsqrt.f32 %v1534_v46 }
0x11ec   : > { %v2177_v47 = vpop.eup %2176 }
0x11ed   : > { %v1536_v49 = vmul.f32 %v2177_v47, %v1528_v40 }
0x11ef   : > { %v1543_v51 = vmul.f32 %v1887_v48, %v1536_v49 }
0x11f1   : > { %v1550_v52 = vadd.f32 %v1888_v50, %v1543_v51 }
0x11f3   : > { %v1551_v53 = vpack.c.bf16 %v1550_v52, %v1550_v52 }
0x11f5   : > { %2070 = vmatmul.mubr.msk.bf16.vlgmr.msra.gmra.mrb[28].mxu1 %vm535_vm0, %v1551_v53 }
0x12c8   : > { %v1614_v59 = vpop.f32.mrb[28].mxu1 }
0x12c9   : > { %v1615_v60 = vadd.f32 %v1894_v58, %v1614_v59  ;;  %v2071_v61 = vpop.f32.mrb[29].mxu1 }
0x12ca   : > { %v1617_v62 = vpop.f32.mrb[30].mxu1 }
0x12cb   : > { %v1621_v63 = vmul.f32 0.044715, %v1615_v60  ;;  %v2072_v0 = vpop.f32.mrb[31].mxu1  ;;  %v1620_v5 = vmul.f32 0.5, %v1615_v60 }
0x12cd   : > { %v1622_v39 = vmul.f32 %v1621_v63, %v1615_v60 }
0x12cf   : > { %v1623_v1 = vmul.f32 %v1622_v39, %v1615_v60 }
0x12d1   : > { %v1624_v2 = vadd.f32 %v1623_v1, %v1615_v60 }
0x12d3   : > { %v1625_v3 = vmul.f32 0.7978846, %v1624_v2 }
0x12d5   : > { %2178 = vtanh.f32 %v1625_v3 }
0x12df   : > { %v2179_v4 = vpop.eup %2178 }
0x12e0   : > { %v1627_v6 = vadd.f32 1.0, %v2179_v4 }
0x12e2   : > { %v1628_v8 = vmul.f32 %v1627_v6, %v1620_v5 }
0x12e4   : > { %v1629_v7 = vpack.c.bf16 %v1628_v8, %v1628_v8 }
0x12e6   : > { %2082 = vmatmul.mubr.msk.bf16.vlgmr.msra.gmra.mrb[28].mxu0 %vm1082_vm5, %v1629_v7 }
0x13b9   : > { %v1708_v10 = vpop.f32.mrb[28].mxu0 }
0x13ba   : > { %v1709_v11 = vadd.f32 %v1907_v9, %v1708_v10  ;;  %v2083_v12 = vpop.f32.mrb[29].mxu0 }
0x13bb   : > { %v1711_v13 = vpop.f32.mrb[30].mxu0 }
0x13bc   : > { %v2084_v14 = vpop.f32.mrb[31].mxu0  ;;  %v1714_v15 = vadd.f32 %v1709_v11, %v1550_v52 }
0x13be   : > { %v1719_v16 = vsel %vm535_vm0, %v1714_v15, 0.0 }
0x13bf   : > { %1720 = vadd.xlane.f32.xlu0 %v1719_v16 }
0x144c   : > { %v1721_v17 = vpop.xlane.xlu0 %1720 }
0x144d   : > { %v1722_v19 = vmul.f32 0.03125, %v1721_v17 }
0x144f   : > { %v1723_v20 = vsub.f32 %v1714_v15, %v1722_v19 }
0x1451   : > { %v1724_v21 = vmul.f32 %v1723_v20, %v1723_v20 }
0x1453   : > { %v1725_v22 = vsel %vm535_vm0, %v1724_v21, 0.0 }
0x1454   : > { %1726 = vadd.xlane.f32.xlu1 %v1725_v22 }
0x14e1   : > { %v1727_v23 = vpop.xlane.xlu1 %1726 }
0x14e2   : > { %v1728_v24 = vmul.f32 0.03125, %v1727_v23 }
0x14e4   : > { %v1729_v25 = vadd.f32 1e-12, %v1728_v24 }
0x14e6   : > { %2180 = vrsqrt.f32 %v1729_v25 }
0x14f0   : > { %v2181_v26 = vpop.eup %2180 }
0x14f1   : > { %v1731_v28 = vmul.f32 %v2181_v26, %v1723_v20 }
0x14f3   : > { %v1738_v30 = vmul.f32 %v1915_v27, %v1731_v28 }
0x14f5   : > { %v1745_v32 = vadd.f32 %v1916_v29, %v1738_v30 }
0x14f7   : > { %1746 = vst.msk [vmem:[%s523_s19] sm:$0xff] %vm535_vm0, %v1745_v32 }
0x14f8   : > { %2195 = shalt.err (!%p2192_p3)
}
0x14f9   : > { %s2196_s2 = scalar_lea.hbm %s2651_s4, 128  ;;  %s2200_s30 = scalar_lea.hbm %s2710_s16, 256 }
0x14fa   : > { %p2197_p4 = scmp.ne.s32.totalorder %s2651_s4, %s2196_s2  ;;  %p2201_p9 = scmp.lt.u32.totalorder %s2651_s4, %s2710_s16 }
0x14fb   : > { %p2202_p10 = scmp.lt.u32.totalorder %s2200_s30, %s2196_s2  ;;  %p2204_p12 = scmp.lt.u32.totalorder %s2196_s2, %s2651_s4 }
0x14fc   : > { %p2198_p7 = pnand %p2197_p4, %p2378_p5 }
0x14fd   : > { %p2203_p11 = por %p2202_p10, %p2201_p9 }
0x14fe   : > { %p2199_p8 = pneg %p2198_p7 }
0x14ff   : > { %p2205_p13 = por %p2204_p12, %p2203_p11 }
0x1501   : > { %p2206_p0 = pnand %p2205_p13, %p2199_p8 }
0x1503   : > { %2209 = shalt.err (!%p2206_p0)
}
0x1504   : > { %2085 = dma.vmem_to_hbm [thread:$0]  (%p2378_p5), %s2653_s1, 128, %s2651_s4, %s1748_s18  }
0x1505 PF: > { %p2091_p1 = scmp.ge.s32.totalorder %s2244_s24, 2  ;;  %s1773_s26 = sand.u32 1, %s2232_s21  }
0x1506   : > { %s1774_s25 = scalar_lea.sflag [#allocation3], %s1773_s26 }
0x1507   : > { %p2088_p2 = pnand %p2091_p1, %p2382_p6 }
0x1509   : > { %2227 = dma.done.wait (!%p2088_p2), %s1774_s25, 128  }
0x150a   : > { %2229 = vsyncadd (!%p2088_p2), %s1774_s25, 4294967168  ;;  %s2738_s29 = sld [smem:[#allocation5_spill]]  ;;  %s2739_s23 = sld [smem:[#allocation6_spill]] }
0x150b   : > { %p26_p3 = scmp.ge.s32.totalorder %s2365_s27, 4   ;;  %s2740_s21 = smov %s2236_s22 }
0x150c   : > { %s2742_s24 = smov %s2365_s27 }
0x150d   :  { %28 = sbr.rel (!%p26_p3) target bundleno = 9 (0x9), region = 134 }
0x1510   : > { %s2741_s22 = smov %s2738_s29 }
0x1514   :  { %1779 = vsyncpa [#allocation3], 1 }
0x1515   :  { %1781 = vsyncpa [#allocation3 + $0x1], 1 }

</bundles_post_ra>
